<compile_context>
chip_gen: v5e
topology: v5e:2x2
jax: 0.10.0
libtpu: 0.0.40
codegen_flags: <defaults>
</compile_context>

<pallas_src>
import math

import numpy as np
import jax
import jax.numpy as jnp
from jax.experimental import pallas as pl
from jax.experimental.pallas import tpu as pltpu

# ----------------------------- hyper-parameters ------------------------------
AUDIO_CHANNELS = 2
SOURCES = 2
CHANNELS = 8
DEPTH = 2
GROWTH = 2.0
KERNEL = 8
STRIDE = 4
CONTEXT = 3

# Set to jnp.bfloat16 on v6e/v7x to halve weight DMA / VMEM bytes (f32 accumulation;
# all elementwise/EUP math stays f32 -- v5e has no bf16 VPU/EUP).  Default f32 keeps
# exact parity with the f32 reference check below.
WEIGHT_DTYPE = jnp.float32

VMEM_SPEC = pl.BlockSpec(memory_space=pltpu.MemorySpace.VMEM)


def _two_tensorcores_per_chip():
    """True on generations with 2 TensorCores per chip (v7x); gates the batch grid."""
    try:
        kind = jax.devices()[0].device_kind.lower()
    except Exception:
        return False
    return ("v7" in kind) or ("7x" in kind)


# ------------------------- fused Pallas forward kernel -----------------------
def _make_kernel(lay):
    f32 = jnp.float32

    def kernel(src_ref, mats_ref, bias_ref, out_ref):
        def mat(name):
            e = lay[name]
            return mats_ref[e['row']:e['row'] + e['rows'], 0:e['cols']]

        def dot(a, m):
            if m.dtype != f32:                  # bf16 weight path: cast activation only
                a = a.astype(m.dtype)
            return jnp.dot(a, m, preferred_element_type=f32)

        def mm(a, name):
            e = lay[name]
            y = dot(a, mat(name))
            if 'boff' in e:
                y = y + bias_ref[:, e['boff']:e['boff'] + e['bcols']]
            act = e.get('act')
            if act == 'relu':
                y = jnp.maximum(y, 0.0)
            elif act == 'glu':                  # halves start on 128-lane boundaries
                h, slot = e['glu_half'], e['glu_slot']
                y = y[:, :h] * jax.nn.sigmoid(y[:, slot:slot + h])
            return y

        # ---- mix = sources.sum(dim=1) ----
        x = src_ref[:, 0, :]
        for s in range(1, src_ref.shape[1]):
            x = x + src_ref[:, s, :]

        # ---- encoder: conv(K,stride)+ReLU, 1x1 conv+GLU ----
        skips = []
        for i in range(DEPTH):
            x = mm(x, f'enc{i}_a')
            x = mm(x, f'enc{i}_b')
            skips.append(x)

        # ---- bidirectional LSTM (fwd+rev fused per step) + Linear(2H->H) ----
        T, H = lay['t_lstm'], lay['hdim']
        blk = 8 * H                              # 2 dirs * 4 gates * H (=128 lanes here)
        bsz = x.shape[0]
        xp = mm(x, 'lstm_in')                    # (B, T*blk) gate pre-activations
        whh = mat('lstm_hh')                     # (2H, blk) block-diag recurrence weights
        h = jnp.zeros((bsz, 2 * H), f32)
        c = jnp.zeros((bsz, 2 * H), f32)
        hs = []
        for s in range(T):                       # static unroll: T is tiny (=3)
            g = xp[:, s * blk:(s + 1) * blk] + dot(h, whh)
            sg = jax.nn.sigmoid(g)               # one full-vreg sigmoid per step
            tg = jnp.tanh(g)                     # one full-vreg tanh per step
            c = sg[:, 2 * H:4 * H] * c + sg[:, 0:2 * H] * tg[:, 4 * H:6 * H]
            h = sg[:, 6 * H:8 * H] * jnp.tanh(c)
            hs.append(h)
        # single output GEMM: Linear(2H->H) + time->channel permutation folded in
        x = mm(jnp.concatenate(hs, axis=-1), 'lstm_out')

        # ---- decoder: conv(x + trim(skip)) as ONE stacked GEMM, GLU, convT ----
        for i in range(DEPTH):
            skip = skips[DEPTH - 1 - i]
            x = mm(jnp.concatenate([x, skip], axis=-1), f'dec{i}_a')
            x = mm(x, f'dec{i}_t')

        out_ref[:, 0, :] = x

    return kernel


def demucs_fused_call(mats, biases, layout, src_flat, *, batch_grid=False):
    kernel = _make_kernel(layout)
    bsz, n_src, ct = src_flat.shape
    out_pad = layout['out_pad']
    out_shape = jax.ShapeDtypeStruct((bsz, 1, out_pad), jnp.float32)
    if batch_grid and bsz > 1:
        # One batch element per grid step; "parallel" lets v7x's 2 TCs split the batch.
        return pl.pallas_call(
            kernel,
            out_shape=out_shape,
            grid=(bsz,),
            in_specs=[pl.BlockSpec((1, n_src, ct), lambda b: (b, 0, 0)),
                      pl.BlockSpec(mats.shape, lambda b: (0, 0)),
                      pl.BlockSpec(biases.shape, lambda b: (0, 0))],
            out_specs=pl.BlockSpec((1, 1, out_pad), lambda b: (b, 0, 0)),
            compiler_params=pltpu.CompilerParams(
                dimension_semantics=("parallel",)),
        )(src_flat, mats, biases)
    return pl.pallas_call(
        kernel,
        out_shape=out_shape,
        in_specs=[VMEM_SPEC, VMEM_SPEC, VMEM_SPEC],
        out_specs=VMEM_SPEC,
    )(src_flat, mats, biases)


# -------------------- unrolled (Toeplitz) weight construction -----------------
# Activations are stored flat as A[b, c*T + t] (channel-major, time-minor).

def _unroll_conv(w, b, tin, tout, stride, offset=0):
    """torch Conv1d weight (Cout, Cin, K) -> GEMM matrix (Cin*Tin, Cout*Tout)."""
    w = np.asarray(w, np.float32)
    b = np.asarray(b, np.float32)
    cout, cin, k = w.shape
    m = np.zeros((cin * tin, cout * tout), np.float32)
    rows_c = np.arange(cin) * tin
    cols_c = np.arange(cout) * tout
    for t in range(tout):
        for kk in range(k):
            tau = t * stride + offset + kk
            m[np.ix_(rows_c + tau, cols_c + t)] = w[:, :, kk].T
    return m, np.repeat(b, tout)


def _unroll_convtr(w, b, tin, tout, stride):
    """torch ConvTranspose1d weight (Cin, Cout, K) -> GEMM matrix; overlap-add folded in."""
    w = np.asarray(w, np.float32)
    b = np.asarray(b, np.float32)
    cin, cout, k = w.shape
    m = np.zeros((cin * tin, cout * tout), np.float32)
    rows_c = np.arange(cin) * tin
    cols_c = np.arange(cout) * tout
    for t in range(tin):
        for kk in range(k):
            tau = t * stride + kk
            m[np.ix_(rows_c + t, cols_c + tau)] = w[:, :, kk]
    return m, np.repeat(b, tout)


def _pad_glu_cols(m, b, half):
    """Re-layout GLU pre-activation columns so both halves start on 128-lane boundaries."""
    slot = max(128, ((half + 127) // 128) * 128)
    rows = m.shape[0]
    mp = np.zeros((rows, 2 * slot), np.float32)
    mp[:, :half] = m[:, :half]
    mp[:, slot:slot + half] = m[:, half:]
    bp = np.zeros((2 * slot,), np.float32)
    bp[:half] = b[:half]
    bp[slot:slot + half] = b[half:]
    return mp, bp, slot


def _pad_cols(m, b, width):
    mp = np.zeros((m.shape[0], width), np.float32)
    mp[:, :m.shape[1]] = m
    bp = np.zeros((width,), np.float32)
    bp[:b.size] = b
    return mp, bp


def _build_lstm_in(p, T, H):
    """Merged fwd+rev per-timestep input projection.

    Column layout per 128-lane timestep block s: gate group (i|f|g|o) * 2H, each group
    split [fwd H | rev H]; forward uses input time s, reverse uses input time T-1-s.
    """
    w_f = np.asarray(p['w_ih'][0], np.float32)          # (4H, C)
    w_r = np.asarray(p['w_ih'][1], np.float32)
    b_f = np.asarray(p['b_ih'][0], np.float32) + np.asarray(p['b_hh'][0], np.float32)
    b_r = np.asarray(p['b_ih'][1], np.float32) + np.asarray(p['b_hh'][1], np.float32)
    C = w_f.shape[1]
    blk = 8 * H
    m = np.zeros((C * T, T * blk), np.float32)
    bias = np.zeros((T * blk,), np.float32)
    for s in range(T):
        for gate in range(4):
            for d, (w, bb, t_in) in enumerate([(w_f, b_f, s), (w_r, b_r, T - 1 - s)]):
                cols = s * blk + gate * 2 * H + d * H + np.arange(H)
                rows = np.arange(C) * T + t_in
                m[np.ix_(rows, cols)] = w[gate * H:(gate + 1) * H, :].T
                bias[cols] = bb[gate * H:(gate + 1) * H]
    return m, bias


def _build_lstm_hh(p, H):
    """Block-diagonal recurrence matrix (2H, 8H): state [h_f | h_r] -> fused gates."""
    w_f = np.asarray(p['w_hh'][0], np.float32)          # (4H, H)
    w_r = np.asarray(p['w_hh'][1], np.float32)
    m = np.zeros((2 * H, 8 * H), np.float32)
    for gate in range(4):
        for d, w in enumerate([w_f, w_r]):
            rows = d * H + np.arange(H)
            cols = gate * 2 * H + d * H + np.arange(H)
            m[np.ix_(rows, cols)] = w[gate * H:(gate + 1) * H, :].T
    return m


def _build_lstm_out(p, T, H):
    """Linear(2H->H) + (time-major -> channel-major) permutation as ONE (T*2H, H*T) GEMM."""
    w = np.asarray(p['w_lin'], np.float32)              # (H, 2H)
    b = np.asarray(p['b_lin'], np.float32)
    m = np.zeros((T * 2 * H, H * T), np.float32)
    for t in range(T):
        rows_f = t * 2 * H + np.arange(H)                # h_f(t) lives in step block s=t
        rows_r = (T - 1 - t) * 2 * H + H + np.arange(H)  # h_r(t) was produced at s=T-1-t
        cols = np.arange(H) * T + t                      # channel-major output (c*T + t)
        m[np.ix_(rows_f, cols)] = w[:, :H].T
        m[np.ix_(rows_r, cols)] = w[:, H:].T
    return m, np.repeat(b, T)


def prepare_fused_params(params, t_in, weight_dtype=jnp.float32):
    """Build the packed matrices/bias buffers + static layout metadata.  Runs once."""
    enc_p, dec_p, lstm_p = params['encoder'], params['decoder'], params['lstm']
    entries = []                                         # (name, matrix, bias|None, meta)

    # ---- encoder ----
    enc_ts = []
    cur_t = t_in
    for i in range(DEPTH):
        t_out = (cur_t - KERNEL) // STRIDE + 1
        m1, b1 = _unroll_conv(enc_p[i]['w1'], enc_p[i]['b1'], cur_t, t_out, STRIDE)
        m2, b2 = _unroll_conv(enc_p[i]['w2'], enc_p[i]['b2'], t_out, t_out, 1)
        half = m2.shape[1] // 2
        m2, b2, slot = _pad_glu_cols(m2, b2, half)
        entries.append((f'enc{i}_a', m1, b1, dict(act='relu')))
        entries.append((f'enc{i}_b', m2, b2,
                        dict(act='glu', glu_half=half, glu_slot=slot)))
        enc_ts.append(t_out)
        cur_t = t_out

    # ---- bidirectional LSTM ----
    t_lstm = enc_ts[-1]
    hdim = int(np.asarray(lstm_p['w_lin']).shape[0])
    lm_cat, lb_cat = _build_lstm_in(lstm_p, t_lstm, hdim)
    whh_cat = _build_lstm_hh(lstm_p, hdim)
    lstk, blin = _build_lstm_out(lstm_p, t_lstm, hdim)
    entries.append(('lstm_in', lm_cat, lb_cat, dict(act=None)))
    entries.append(('lstm_hh', whh_cat, None, dict(act=None)))
    entries.append(('lstm_out', lstk, blin, dict(act=None)))

    # ---- decoder ----
    cur_t = t_lstm
    out_pad = None
    for i in range(DEPTH):
        d = dec_p[i]
        skip_t = enc_ts[DEPTH - 1 - i]
        offset = (skip_t - cur_t) // 2                   # center_trim folded into the GEMM
        conv_t = cur_t - CONTEXT + 1
        mx, bc = _unroll_conv(d['w1'], d['b1'], cur_t, conv_t, 1, 0)
        ms, _ = _unroll_conv(d['w1'], d['b1'], skip_t, conv_t, 1, offset)
        mcat = np.vstack([mx, ms])                       # rows = [x rows ; skip rows]
        half = mcat.shape[1] // 2
        mcat, bc, slot = _pad_glu_cols(mcat, bc, half)
        entries.append((f'dec{i}_a', mcat, bc,
                        dict(act='glu', glu_half=half, glu_slot=slot)))
        tr_t = (conv_t - 1) * STRIDE + KERNEL
        mt, bt = _unroll_convtr(d['wt'], d['bt'], conv_t, tr_t, STRIDE)
        if i == DEPTH - 1:
            out_dim = mt.shape[1]
            out_pad = ((out_dim + 127) // 128) * 128     # lane-dense final store
            mt, bt = _pad_cols(mt, bt, out_pad)
            entries.append((f'dec{i}_t', mt, bt, dict(act=None)))
        else:
            entries.append((f'dec{i}_t', mt, bt, dict(act='relu')))
        cur_t = tr_t

    # ---- pack: one matrices buffer (8-aligned row offsets), one 128-aligned bias buffer --
    max_cols = max(m.shape[1] for _, m, _, _ in entries)
    total_rows = sum(m.shape[0] + (-m.shape[0]) % 8 for _, m, _, _ in entries)
    mats_np = np.zeros((total_rows, max_cols), np.float32)
    bias_parts = []
    layout = dict(t_lstm=t_lstm, hdim=hdim, t_out=cur_t,
                  out_dim=SOURCES * AUDIO_CHANNELS * cur_t, out_pad=out_pad)
    row, boff = 0, 0
    for name, m, b, meta in entries:
        r, c = int(m.shape[0]), int(m.shape[1])
        mats_np[row:row + r, :c] = m
        e = dict(row=row, rows=r, cols=c)
        e.update(meta)
        if b is not None:
            bw = ((int(b.size) + 127) // 128) * 128
            bp = np.zeros((bw,), np.float32)
            bp[:b.size] = b
            bias_parts.append(bp)
            e['boff'] = boff
            e['bcols'] = int(b.size)
            boff += bw
        layout[name] = e
        row += r + (-r) % 8
    biases_np = np.concatenate(bias_parts).reshape(1, -1)
    mats = jnp.asarray(mats_np, weight_dtype)
    biases = jnp.asarray(biases_np, jnp.float32)
    return mats, biases, layout


# ------------------------------ wrapper forward -------------------------------
def demucs_wrapper_forward(mats, biases, layout, streams, *, batch_grid=False):
    sources = streams[:, 1:]
    # TODO(synk): torchbench augment Sequential treated as identity (RNG-driven).
    bsz, n_src, n_ch, t_in = sources.shape
    src_flat = sources.reshape(bsz, n_src, n_ch * t_in)
    out = demucs_fused_call(mats, biases, layout, src_flat, batch_grid=batch_grid)
    out = out[:, 0, :layout['out_dim']]
    model_out = out.reshape(bsz, SOURCES, AUDIO_CHANNELS, layout['t_out'])
    return sources, model_out


# ------------------------ pure-JAX reference (for checking) -------------------
def _ref_conv1d(x, w, b, stride):
    bsz, cin, t_in = x.shape
    cout, _, k = w.shape
    t_out = (t_in - k) // stride + 1
    cols = jnp.stack([x[:, :, t * stride:t * stride + k].reshape(bsz, cin * k)
                      for t in range(t_out)], axis=2)
    return jnp.einsum('ok,bkt->bot', w.reshape(cout, cin * k), cols) + b[None, :, None]


def _ref_convtr1d(x, w, b, stride):
    bsz, cin, t_in = x.shape
    _, cout, k = w.shape
    t_out = (t_in - 1) * stride + k
    y = jnp.einsum('bct,cok->botk', x, w)
    out = jnp.zeros((bsz, cout, t_out), jnp.float32)
    for kk in range(k):
        out = out.at[:, :, kk:kk + (t_in - 1) * stride + 1:stride].add(y[:, :, :, kk])
    return out + b[None, :, None]


def _ref_glu(x):
    c = x.shape[1] // 2
    return x[:, :c] * jax.nn.sigmoid(x[:, c:])


def _ref_center_trim(x, length):
    delta = x.shape[-1] - length
    if delta == 0:
        return x
    return x[:, :, delta // 2: x.shape[-1] - (delta - delta // 2)]


def _ref_lstm_dir(x_tbc, w_ih, w_hh, b_ih, b_hh):
    t_steps, bsz, _ = x_tbc.shape
    hdim = w_hh.shape[1]
    h = jnp.zeros((bsz, hdim), jnp.float32)
    c = jnp.zeros((bsz, hdim), jnp.float32)
    outs = []
    for t in range(t_steps):
        g = x_tbc[t] @ w_ih.T + h @ w_hh.T + b_ih + b_hh
        ig = jax.nn.sigmoid(g[:, :hdim])
        fg = jax.nn.sigmoid(g[:, hdim:2 * hdim])
        gg = jnp.tanh(g[:, 2 * hdim:3 * hdim])
        og = jax.nn.sigmoid(g[:, 3 * hdim:])
        c = fg * c + ig * gg
        h = og * jnp.tanh(c)
        outs.append(h)
    return jnp.stack(outs, 0)


def _ref_blstm(p, x_bct):
    xt = jnp.transpose(x_bct, (2, 0, 1))
    hf = _ref_lstm_dir(xt, p['w_ih'][0], p['w_hh'][0], p['b_ih'][0], p['b_hh'][0])
    hr = _ref_lstm_dir(xt[::-1], p['w_ih'][1], p['w_hh'][1],
                       p['b_ih'][1], p['b_hh'][1])[::-1]
    h = jnp.concatenate([hf, hr], axis=-1)
    y = h @ p['w_lin'].T + p['b_lin']
    return jnp.transpose(y, (1, 2, 0))


def demucs_reference(params, mix):
    x = mix
    saved = [x]
    for enc in params['encoder']:
        x = jax.nn.relu(_ref_conv1d(x, enc['w1'], enc['b1'], STRIDE))
        x = _ref_glu(_ref_conv1d(x, enc['w2'], enc['b2'], 1))
        saved.append(x)
    x = _ref_blstm(params['lstm'], x)
    n_dec = len(params['decoder'])
    for i, dec in enumerate(params['decoder']):
        skip = _ref_center_trim(saved.pop(-1), x.shape[-1])
        x = x + skip
        x = _ref_glu(_ref_conv1d(x, dec['w1'], dec['b1'], 1))
        x = _ref_convtr1d(x, dec['wt'], dec['bt'], STRIDE)
        if i != n_dec - 1:
            x = jax.nn.relu(x)
    return x.reshape(x.shape[0], SOURCES, AUDIO_CHANNELS, x.shape[-1])


# ------------------------------ parameter init --------------------------------
class ParamGen:
    def __init__(self, key):
        self.key = key
        self.i = 0

    def __call__(self, shape, scale=0.1):
        self.i += 1
        k = jax.random.fold_in(self.key, self.i)
        return jax.random.normal(k, shape, jnp.float32) * scale


def init_params(key):
    g = ParamGen(key)
    encoder, decoder = [], []
    in_ch = AUDIO_CHANNELS
    ch = CHANNELS
    for index in range(DEPTH):
        encoder.append(dict(
            w1=g((ch, in_ch, KERNEL)), b1=g((ch,)),
            w2=g((2 * ch, ch, 1)), b2=g((2 * ch,))))
        out_ch = in_ch if index > 0 else SOURCES * AUDIO_CHANNELS
        decoder.insert(0, dict(
            w1=g((2 * ch, ch, CONTEXT)), b1=g((2 * ch,)),
            wt=g((ch, out_ch, KERNEL)), bt=g((out_ch,))))
        in_ch = ch
        ch = int(GROWTH * ch)
    dim = in_ch
    lstm = dict(
        w_ih=g((2, 4 * dim, dim)), w_hh=g((2, 4 * dim, dim)),
        b_ih=g((2, 4 * dim)), b_hh=g((2, 4 * dim)),
        w_lin=g((dim, 2 * dim)), b_lin=g((dim,)))
    return dict(encoder=encoder, decoder=decoder, lstm=lstm)


def valid_length(length):
    for _ in range(DEPTH):
        length = math.ceil((length - KERNEL) / STRIDE) + 1
        length = max(1, length)
        length += CONTEXT - 1
    for _ in range(DEPTH):
        length = (length - 1) * STRIDE + KERNEL
    return int(length)


# ----------------------------------- main --------------------------------------
if __name__ == "__main__":
    key = jax.random.PRNGKey(0)
    params = init_params(jax.random.fold_in(key, 1))

    B = 2
    T = valid_length(16)                               # = 68
    mats, biases, layout = prepare_fused_params(params, T, WEIGHT_DTYPE)

    streams = jax.random.normal(
        jax.random.fold_in(key, 2), (B, 1 + SOURCES, AUDIO_CHANNELS, T), jnp.float32)

    use_grid = _two_tensorcores_per_chip()             # batch grid only where it helps
    fwd = jax.jit(lambda s: demucs_wrapper_forward(mats, biases, layout, s,
                                                   batch_grid=use_grid))
    sources_out, model_out = fwd(streams)
    jax.block_until_ready(sources_out)
    jax.block_until_ready(model_out)

    assert sources_out.shape == (B, SOURCES, AUDIO_CHANNELS, T)
    assert model_out.shape == (B, SOURCES, AUDIO_CHANNELS, layout['t_out'])

    # Numerical check of the fused kernel against a straightforward JAX reference.
    mix = jnp.sum(streams[:, 1:], axis=1)
    ref_out = jax.jit(lambda m: demucs_reference(params, m))(mix)
    np.testing.assert_allclose(np.asarray(model_out), np.asarray(ref_out),
                               rtol=1e-2, atol=1e-3)

    # Also validate the batch-grid path (used on 2-TensorCore chips) on this device.
    fwd_grid = jax.jit(lambda s: demucs_wrapper_forward(mats, biases, layout, s,
                                                        batch_grid=True))
    _, model_out_grid = fwd_grid(streams)
    jax.block_until_ready(model_out_grid)
    np.testing.assert_allclose(np.asarray(model_out_grid), np.asarray(ref_out),
                               rtol=1e-2, atol=1e-3)

    print("KERNEL_OK")
</pallas_src>

<mosaic_0001>
module attributes {stable_mosaic.version = 11 : i64} {
  func.func @kernel(%arg0: memref<2x2x136xf32, #tpu.memory_space<vmem>>, %arg1: memref<968x384xf32, #tpu.memory_space<vmem>>, %arg2: memref<1x2048xf32, #tpu.memory_space<vmem>>, %arg3: memref<2x1x128xf32, #tpu.memory_space<vmem>>) attributes {dimension_semantics = [], scalar_prefetch = 0 : i64, scratch_operands = 0 : i64, tpu.core_type = #tpu.core_type<tc>} {
    %c0 = arith.constant 0 : index
    %c0_0 = arith.constant 0 : index
    %c0_1 = arith.constant 0 : index
    %0 = vector.load %arg0[%c0, %c0_0, %c0_1] : memref<2x2x136xf32, #tpu.memory_space<vmem>>, vector<2x1x136xf32>
    %1 = vector.shape_cast %0 : vector<2x1x136xf32> to vector<2x136xf32>
    %c0_2 = arith.constant 0 : index
    %c1 = arith.constant 1 : index
    %c0_3 = arith.constant 0 : index
    %2 = vector.load %arg0[%c0_2, %c1, %c0_3] : memref<2x2x136xf32, #tpu.memory_space<vmem>>, vector<2x1x136xf32>
    %3 = vector.shape_cast %2 : vector<2x1x136xf32> to vector<2x136xf32>
    %4 = arith.addf %1, %3 : vector<2x136xf32>
    %c0_4 = arith.constant 0 : index
    %c0_5 = arith.constant 0 : index
    %5 = vector.load %arg1[%c0_4, %c0_5] : memref<968x384xf32, #tpu.memory_space<vmem>>, vector<136x128xf32>
    %cst = arith.constant dense<0.000000e+00> : vector<2x128xf32>
    %6 = tpu.matmul %4, %5, %cst {dimension_numbers = #tpu.dot_dimension_numbers<[1], [0], [0], [1], [0, 0, 1, 1], [], []>} : vector<2x136xf32>, vector<136x128xf32>, vector<2x128xf32> -> vector<2x128xf32>
    %c0_6 = arith.constant 0 : index
    %c0_7 = arith.constant 0 : index
    %7 = vector.load %arg2[%c0_6, %c0_7] : memref<1x2048xf32, #tpu.memory_space<vmem>>, vector<1x128xf32>
    %8 = vector.broadcast %7 : vector<1x128xf32> to vector<2x128xf32>
    %9 = arith.addf %6, %8 : vector<2x128xf32>
    %cst_8 = arith.constant 0.000000e+00 : f32
    %10 = vector.broadcast %cst_8 : f32 to vector<2x128xf32>
    %11 = arith.maximumf %9, %10 : vector<2x128xf32>
    %c136 = arith.constant 136 : index
    %c0_9 = arith.constant 0 : index
    %12 = vector.load %arg1[%c136, %c0_9] : memref<968x384xf32, #tpu.memory_space<vmem>>, vector<128x256xf32>
    %cst_10 = arith.constant dense<0.000000e+00> : vector<2x256xf32>
    %13 = tpu.matmul %11, %12, %cst_10 {dimension_numbers = #tpu.dot_dimension_numbers<[1], [0], [0], [1], [0, 0, 1, 1], [], []>} : vector<2x128xf32>, vector<128x256xf32>, vector<2x256xf32> -> vector<2x256xf32>
    %c0_11 = arith.constant 0 : index
    %c128 = arith.constant 128 : index
    %14 = vector.load %arg2[%c0_11, %c128] : memref<1x2048xf32, #tpu.memory_space<vmem>>, vector<1x256xf32>
    %15 = vector.broadcast %14 : vector<1x256xf32> to vector<2x256xf32>
    %16 = arith.addf %13, %15 : vector<2x256xf32>
    %17 = vector.extract_strided_slice %16 {offsets = [0, 0], sizes = [2, 128], strides = [1, 1]} : vector<2x256xf32> to vector<2x128xf32>
    %18 = vector.extract_strided_slice %16 {offsets = [0, 128], sizes = [2, 128], strides = [1, 1]} : vector<2x256xf32> to vector<2x128xf32>
    %19 = arith.negf %18 : vector<2x128xf32>
    %20 = math.exp %19 : vector<2x128xf32>
    %cst_12 = arith.constant 1.000000e+00 : f32
    %21 = vector.broadcast %cst_12 : f32 to vector<2x128xf32>
    %22 = arith.addf %21, %20 : vector<2x128xf32>
    %23 = arith.divf %21, %22 : vector<2x128xf32>
    %24 = arith.mulf %17, %23 : vector<2x128xf32>
    %c264 = arith.constant 264 : index
    %c0_13 = arith.constant 0 : index
    %25 = vector.load %arg1[%c264, %c0_13] : memref<968x384xf32, #tpu.memory_space<vmem>>, vector<128x48xf32>
    %cst_14 = arith.constant dense<0.000000e+00> : vector<2x48xf32>
    %26 = tpu.matmul %24, %25, %cst_14 {dimension_numbers = #tpu.dot_dimension_numbers<[1], [0], [0], [1], [0, 0, 1, 1], [], []>} : vector<2x128xf32>, vector<128x48xf32>, vector<2x48xf32> -> vector<2x48xf32>
    %c0_15 = arith.constant 0 : index
    %c384 = arith.constant 384 : index
    %27 = vector.load %arg2[%c0_15, %c384] : memref<1x2048xf32, #tpu.memory_space<vmem>>, vector<1x48xf32>
    %28 = vector.broadcast %27 : vector<1x48xf32> to vector<2x48xf32>
    %29 = arith.addf %26, %28 : vector<2x48xf32>
    %cst_16 = arith.constant 0.000000e+00 : f32
    %30 = vector.broadcast %cst_16 : f32 to vector<2x48xf32>
    %31 = arith.maximumf %29, %30 : vector<2x48xf32>
    %c392 = arith.constant 392 : index
    %c0_17 = arith.constant 0 : index
    %32 = vector.load %arg1[%c392, %c0_17] : memref<968x384xf32, #tpu.memory_space<vmem>>, vector<48x256xf32>
    %cst_18 = arith.constant dense<0.000000e+00> : vector<2x256xf32>
    %33 = tpu.matmul %31, %32, %cst_18 {dimension_numbers = #tpu.dot_dimension_numbers<[1], [0], [0], [1], [0, 0, 1, 1], [], []>} : vector<2x48xf32>, vector<48x256xf32>, vector<2x256xf32> -> vector<2x256xf32>
    %c0_19 = arith.constant 0 : index
    %c512 = arith.constant 512 : index
    %34 = vector.load %arg2[%c0_19, %c512] : memref<1x2048xf32, #tpu.memory_space<vmem>>, vector<1x256xf32>
    %35 = vector.broadcast %34 : vector<1x256xf32> to vector<2x256xf32>
    %36 = arith.addf %33, %35 : vector<2x256xf32>
    %37 = vector.extract_strided_slice %36 {offsets = [0, 0], sizes = [2, 48], strides = [1, 1]} : vector<2x256xf32> to vector<2x48xf32>
    %38 = vector.extract_strided_slice %36 {offsets = [0, 128], sizes = [2, 48], strides = [1, 1]} : vector<2x256xf32> to vector<2x48xf32>
    %39 = arith.negf %38 : vector<2x48xf32>
    %40 = math.exp %39 : vector<2x48xf32>
    %cst_20 = arith.constant 1.000000e+00 : f32
    %41 = vector.broadcast %cst_20 : f32 to vector<2x48xf32>
    %42 = arith.addf %41, %40 : vector<2x48xf32>
    %43 = arith.divf %41, %42 : vector<2x48xf32>
    %44 = arith.mulf %37, %43 : vector<2x48xf32>
    %c440 = arith.constant 440 : index
    %c0_21 = arith.constant 0 : index
    %45 = vector.load %arg1[%c440, %c0_21] : memref<968x384xf32, #tpu.memory_space<vmem>>, vector<48x384xf32>
    %cst_22 = arith.constant dense<0.000000e+00> : vector<2x384xf32>
    %46 = tpu.matmul %44, %45, %cst_22 {dimension_numbers = #tpu.dot_dimension_numbers<[1], [0], [0], [1], [0, 0, 1, 1], [], []>} : vector<2x48xf32>, vector<48x384xf32>, vector<2x384xf32> -> vector<2x384xf32>
    %c0_23 = arith.constant 0 : index
    %c768 = arith.constant 768 : index
    %47 = vector.load %arg2[%c0_23, %c768] : memref<1x2048xf32, #tpu.memory_space<vmem>>, vector<1x384xf32>
    %48 = vector.broadcast %47 : vector<1x384xf32> to vector<2x384xf32>
    %49 = arith.addf %46, %48 : vector<2x384xf32>
    %c488 = arith.constant 488 : index
    %c0_24 = arith.constant 0 : index
    %50 = vector.load %arg1[%c488, %c0_24] : memref<968x384xf32, #tpu.memory_space<vmem>>, vector<32x128xf32>
    %cst_25 = arith.constant 0.000000e+00 : f32
    %51 = vector.broadcast %cst_25 : f32 to vector<2x32xf32>
    %cst_26 = arith.constant 0.000000e+00 : f32
    %52 = vector.broadcast %cst_26 : f32 to vector<2x32xf32>
    %53 = vector.extract_strided_slice %49 {offsets = [0, 0], sizes = [2, 128], strides = [1, 1]} : vector<2x384xf32> to vector<2x128xf32>
    %cst_27 = arith.constant dense<0.000000e+00> : vector<2x128xf32>
    %54 = tpu.matmul %51, %50, %cst_27 {dimension_numbers = #tpu.dot_dimension_numbers<[1], [0], [0], [1], [0, 0, 1, 1], [], []>} : vector<2x32xf32>, vector<32x128xf32>, vector<2x128xf32> -> vector<2x128xf32>
    %55 = arith.addf %53, %54 : vector<2x128xf32>
    %56 = arith.negf %55 : vector<2x128xf32>
    %57 = math.exp %56 : vector<2x128xf32>
    %cst_28 = arith.constant 1.000000e+00 : f32
    %58 = vector.broadcast %cst_28 : f32 to vector<2x128xf32>
    %59 = arith.addf %58, %57 : vector<2x128xf32>
    %60 = arith.divf %58, %59 : vector<2x128xf32>
    %61 = math.tanh %55 : vector<2x128xf32>
    %62 = vector.extract_strided_slice %60 {offsets = [0, 32], sizes = [2, 32], strides = [1, 1]} : vector<2x128xf32> to vector<2x32xf32>
    %63 = arith.mulf %62, %52 : vector<2x32xf32>
    %64 = vector.extract_strided_slice %60 {offsets = [0, 0], sizes = [2, 32], strides = [1, 1]} : vector<2x128xf32> to vector<2x32xf32>
    %65 = vector.extract_strided_slice %61 {offsets = [0, 64], sizes = [2, 32], strides = [1, 1]} : vector<2x128xf32> to vector<2x32xf32>
    %66 = arith.mulf %64, %65 : vector<2x32xf32>
    %67 = arith.addf %63, %66 : vector<2x32xf32>
    %68 = vector.extract_strided_slice %60 {offsets = [0, 96], sizes = [2, 32], strides = [1, 1]} : vector<2x128xf32> to vector<2x32xf32>
    %69 = math.tanh %67 : vector<2x32xf32>
    %70 = arith.mulf %68, %69 : vector<2x32xf32>
    %71 = vector.extract_strided_slice %49 {offsets = [0, 128], sizes = [2, 128], strides = [1, 1]} : vector<2x384xf32> to vector<2x128xf32>
    %cst_29 = arith.constant dense<0.000000e+00> : vector<2x128xf32>
    %72 = tpu.matmul %70, %50, %cst_29 {dimension_numbers = #tpu.dot_dimension_numbers<[1], [0], [0], [1], [0, 0, 1, 1], [], []>} : vector<2x32xf32>, vector<32x128xf32>, vector<2x128xf32> -> vector<2x128xf32>
    %73 = arith.addf %71, %72 : vector<2x128xf32>
    %74 = arith.negf %73 : vector<2x128xf32>
    %75 = math.exp %74 : vector<2x128xf32>
    %cst_30 = arith.constant 1.000000e+00 : f32
    %76 = vector.broadcast %cst_30 : f32 to vector<2x128xf32>
    %77 = arith.addf %76, %75 : vector<2x128xf32>
    %78 = arith.divf %76, %77 : vector<2x128xf32>
    %79 = math.tanh %73 : vector<2x128xf32>
    %80 = vector.extract_strided_slice %78 {offsets = [0, 32], sizes = [2, 32], strides = [1, 1]} : vector<2x128xf32> to vector<2x32xf32>
    %81 = arith.mulf %80, %67 : vector<2x32xf32>
    %82 = vector.extract_strided_slice %78 {offsets = [0, 0], sizes = [2, 32], strides = [1, 1]} : vector<2x128xf32> to vector<2x32xf32>
    %83 = vector.extract_strided_slice %79 {offsets = [0, 64], sizes = [2, 32], strides = [1, 1]} : vector<2x128xf32> to vector<2x32xf32>
    %84 = arith.mulf %82, %83 : vector<2x32xf32>
    %85 = arith.addf %81, %84 : vector<2x32xf32>
    %86 = vector.extract_strided_slice %78 {offsets = [0, 96], sizes = [2, 32], strides = [1, 1]} : vector<2x128xf32> to vector<2x32xf32>
    %87 = math.tanh %85 : vector<2x32xf32>
    %88 = arith.mulf %86, %87 : vector<2x32xf32>
    %89 = vector.extract_strided_slice %49 {offsets = [0, 256], sizes = [2, 128], strides = [1, 1]} : vector<2x384xf32> to vector<2x128xf32>
    %cst_31 = arith.constant dense<0.000000e+00> : vector<2x128xf32>
    %90 = tpu.matmul %88, %50, %cst_31 {dimension_numbers = #tpu.dot_dimension_numbers<[1], [0], [0], [1], [0, 0, 1, 1], [], []>} : vector<2x32xf32>, vector<32x128xf32>, vector<2x128xf32> -> vector<2x128xf32>
    %91 = arith.addf %89, %90 : vector<2x128xf32>
    %92 = arith.negf %91 : vector<2x128xf32>
    %93 = math.exp %92 : vector<2x128xf32>
    %cst_32 = arith.constant 1.000000e+00 : f32
    %94 = vector.broadcast %cst_32 : f32 to vector<2x128xf32>
    %95 = arith.addf %94, %93 : vector<2x128xf32>
    %96 = arith.divf %94, %95 : vector<2x128xf32>
    %97 = math.tanh %91 : vector<2x128xf32>
    %98 = vector.extract_strided_slice %96 {offsets = [0, 32], sizes = [2, 32], strides = [1, 1]} : vector<2x128xf32> to vector<2x32xf32>
    %99 = arith.mulf %98, %85 : vector<2x32xf32>
    %100 = vector.extract_strided_slice %96 {offsets = [0, 0], sizes = [2, 32], strides = [1, 1]} : vector<2x128xf32> to vector<2x32xf32>
    %101 = vector.extract_strided_slice %97 {offsets = [0, 64], sizes = [2, 32], strides = [1, 1]} : vector<2x128xf32> to vector<2x32xf32>
    %102 = arith.mulf %100, %101 : vector<2x32xf32>
    %103 = arith.addf %99, %102 : vector<2x32xf32>
    %104 = vector.extract_strided_slice %96 {offsets = [0, 96], sizes = [2, 32], strides = [1, 1]} : vector<2x128xf32> to vector<2x32xf32>
    %105 = math.tanh %103 : vector<2x32xf32>
    %106 = arith.mulf %104, %105 : vector<2x32xf32>
    %107 = tpu.concatenate %70, %88, %106 in 1 : vector<2x32xf32>, vector<2x32xf32>, vector<2x32xf32> -> vector<2x96xf32>
    %c520 = arith.constant 520 : index
    %c0_33 = arith.constant 0 : index
    %108 = vector.load %arg1[%c520, %c0_33] : memref<968x384xf32, #tpu.memory_space<vmem>>, vector<96x48xf32>
    %cst_34 = arith.constant dense<0.000000e+00> : vector<2x48xf32>
    %109 = tpu.matmul %107, %108, %cst_34 {dimension_numbers = #tpu.dot_dimension_numbers<[1], [0], [0], [1], [0, 0, 1, 1], [], []>} : vector<2x96xf32>, vector<96x48xf32>, vector<2x48xf32> -> vector<2x48xf32>
    %c0_35 = arith.constant 0 : index
    %c1152 = arith.constant 1152 : index
    %110 = vector.load %arg2[%c0_35, %c1152] : memref<1x2048xf32, #tpu.memory_space<vmem>>, vector<1x48xf32>
    %111 = vector.broadcast %110 : vector<1x48xf32> to vector<2x48xf32>
    %112 = arith.addf %109, %111 : vector<2x48xf32>
    %113 = tpu.concatenate %112, %44 in 1 : vector<2x48xf32>, vector<2x48xf32> -> vector<2x96xf32>
    %c616 = arith.constant 616 : index
    %c0_36 = arith.constant 0 : index
    %114 = vector.load %arg1[%c616, %c0_36] : memref<968x384xf32, #tpu.memory_space<vmem>>, vector<96x256xf32>
    %cst_37 = arith.constant dense<0.000000e+00> : vector<2x256xf32>
    %115 = tpu.matmul %113, %114, %cst_37 {dimension_numbers = #tpu.dot_dimension_numbers<[1], [0], [0], [1], [0, 0, 1, 1], [], []>} : vector<2x96xf32>, vector<96x256xf32>, vector<2x256xf32> -> vector<2x256xf32>
    %c0_38 = arith.constant 0 : index
    %c1280 = arith.constant 1280 : index
    %116 = vector.load %arg2[%c0_38, %c1280] : memref<1x2048xf32, #tpu.memory_space<vmem>>, vector<1x256xf32>
    %117 = vector.broadcast %116 : vector<1x256xf32> to vector<2x256xf32>
    %118 = arith.addf %115, %117 : vector<2x256xf32>
    %119 = vector.extract_strided_slice %118 {offsets = [0, 0], sizes = [2, 16], strides = [1, 1]} : vector<2x256xf32> to vector<2x16xf32>
    %120 = vector.extract_strided_slice %118 {offsets = [0, 128], sizes = [2, 16], strides = [1, 1]} : vector<2x256xf32> to vector<2x16xf32>
    %121 = arith.negf %120 : vector<2x16xf32>
    %122 = math.exp %121 : vector<2x16xf32>
    %cst_39 = arith.constant 1.000000e+00 : f32
    %123 = vector.broadcast %cst_39 : f32 to vector<2x16xf32>
    %124 = arith.addf %123, %122 : vector<2x16xf32>
    %125 = arith.divf %123, %124 : vector<2x16xf32>
    %126 = arith.mulf %119, %125 : vector<2x16xf32>
    %c712 = arith.constant 712 : index
    %c0_40 = arith.constant 0 : index
    %127 = vector.load %arg1[%c712, %c0_40] : memref<968x384xf32, #tpu.memory_space<vmem>>, vector<16x64xf32>
    %cst_41 = arith.constant dense<0.000000e+00> : vector<2x64xf32>
    %128 = tpu.matmul %126, %127, %cst_41 {dimension_numbers = #tpu.dot_dimension_numbers<[1], [0], [0], [1], [0, 0, 1, 1], [], []>} : vector<2x16xf32>, vector<16x64xf32>, vector<2x64xf32> -> vector<2x64xf32>
    %c0_42 = arith.constant 0 : index
    %c1536 = arith.constant 1536 : index
    %129 = vector.load %arg2[%c0_42, %c1536] : memref<1x2048xf32, #tpu.memory_space<vmem>>, vector<1x64xf32>
    %130 = vector.broadcast %129 : vector<1x64xf32> to vector<2x64xf32>
    %131 = arith.addf %128, %130 : vector<2x64xf32>
    %cst_43 = arith.constant 0.000000e+00 : f32
    %132 = vector.broadcast %cst_43 : f32 to vector<2x64xf32>
    %133 = arith.maximumf %131, %132 : vector<2x64xf32>
    %134 = tpu.concatenate %133, %24 in 1 : vector<2x64xf32>, vector<2x128xf32> -> vector<2x192xf32>
    %c728 = arith.constant 728 : index
    %c0_44 = arith.constant 0 : index
    %135 = vector.load %arg1[%c728, %c0_44] : memref<968x384xf32, #tpu.memory_space<vmem>>, vector<192x256xf32>
    %cst_45 = arith.constant dense<0.000000e+00> : vector<2x256xf32>
    %136 = tpu.matmul %134, %135, %cst_45 {dimension_numbers = #tpu.dot_dimension_numbers<[1], [0], [0], [1], [0, 0, 1, 1], [], []>} : vector<2x192xf32>, vector<192x256xf32>, vector<2x256xf32> -> vector<2x256xf32>
    %c0_46 = arith.constant 0 : index
    %c1664 = arith.constant 1664 : index
    %137 = vector.load %arg2[%c0_46, %c1664] : memref<1x2048xf32, #tpu.memory_space<vmem>>, vector<1x256xf32>
    %138 = vector.broadcast %137 : vector<1x256xf32> to vector<2x256xf32>
    %139 = arith.addf %136, %138 : vector<2x256xf32>
    %140 = vector.extract_strided_slice %139 {offsets = [0, 0], sizes = [2, 48], strides = [1, 1]} : vector<2x256xf32> to vector<2x48xf32>
    %141 = vector.extract_strided_slice %139 {offsets = [0, 128], sizes = [2, 48], strides = [1, 1]} : vector<2x256xf32> to vector<2x48xf32>
    %142 = arith.negf %141 : vector<2x48xf32>
    %143 = math.exp %142 : vector<2x48xf32>
    %cst_47 = arith.constant 1.000000e+00 : f32
    %144 = vector.broadcast %cst_47 : f32 to vector<2x48xf32>
    %145 = arith.addf %144, %143 : vector<2x48xf32>
    %146 = arith.divf %144, %145 : vector<2x48xf32>
    %147 = arith.mulf %140, %146 : vector<2x48xf32>
    %c920 = arith.constant 920 : index
    %c0_48 = arith.constant 0 : index
    %148 = vector.load %arg1[%c920, %c0_48] : memref<968x384xf32, #tpu.memory_space<vmem>>, vector<48x128xf32>
    %cst_49 = arith.constant dense<0.000000e+00> : vector<2x128xf32>
    %149 = tpu.matmul %147, %148, %cst_49 {dimension_numbers = #tpu.dot_dimension_numbers<[1], [0], [0], [1], [0, 0, 1, 1], [], []>} : vector<2x48xf32>, vector<48x128xf32>, vector<2x128xf32> -> vector<2x128xf32>
    %c0_50 = arith.constant 0 : index
    %c1920 = arith.constant 1920 : index
    %150 = vector.load %arg2[%c0_50, %c1920] : memref<1x2048xf32, #tpu.memory_space<vmem>>, vector<1x128xf32>
    %151 = vector.broadcast %150 : vector<1x128xf32> to vector<2x128xf32>
    %152 = arith.addf %149, %151 : vector<2x128xf32>
    %c0_51 = arith.constant 0 : index
    %c0_52 = arith.constant 0 : index
    %c0_53 = arith.constant 0 : index
    %153 = vector.load %arg3[%c0_51, %c0_52, %c0_53] : memref<2x1x128xf32, #tpu.memory_space<vmem>>, vector<2x1x128xf32>
    %154 = vector.shape_cast %153 : vector<2x1x128xf32> to vector<2x128xf32>
    %155 = vector.shape_cast %152 : vector<2x128xf32> to vector<2x1x128xf32>
    tpu.vector_store %arg3[%c0_51, %c0_52, %c0_53], %155 {strides = array<i32>} : memref<2x1x128xf32, #tpu.memory_space<vmem>>, vector<2x1x128xf32>,
    return
  }
}

</mosaic_0001>

<bundles_post_ra>
// kernel: squeeze.1
= control target key start
LH: loop header
LB: loop body
LE: loop exit
PB: predicated region body
PF: predicated region fallthrough
CT: control target
= control target key end

     0   :  { %s114_s0 = inlined_call_operand.vmem [shape: f32[2,112], index: 0, kind: input, shape index: {}]   ;;  %s115_s1 = inlined_call_operand.hbm [shape: f32[2,2,2,28], index: 1, kind: output, shape index: {}]  }
   0x1   :  { %v5_v0 = vld [vmem:[%s114_s0] sm:$0x3] }
   0x2   :  { %6 = vst [vmem:[#allocation3] sm:$0x3] %v5_v0 }
   0x3   :  { %2 = vsyncpa [#allocation1], 0  ;;  %s94_s0 = smov 100   ;;  %s95_s8 = smov 44   ;;  %vm8_vm0 = vcmask 228352  }
   0x4   :  { %s96_s9 = smov 72   ;;  %s97_s10 = smov [#allocation0]  }
   0x5   :  { %s55_s11 = sshll.u32 %s97_s10, 4  ;;  %s57_s1 = sshll.u32 %s115_s1, 4  ;;  %s56_s11 = int_to_ptr.vmem [resolvable:$true] %s55_s11  ;;  %s58_s1 = int_to_ptr.hbm [resolvable:$true] %s57_s1 }
   0x9   :  { %v10_v1 = vld [vmem:[#allocation3] sm:$0x3]  }
   0xa   :  { %v22_v2 = vld [vmem:[#allocation3] sm:$0x3]   ;;  %11 = vrot.lane.b32.xlu0 %v10_v1, %s94_s0 }
   0xb   :  { %23 = vrot.lane.b32.xlu1 %v22_v2, %s95_s8  ;;  %v16_v3 = vld [vmem:[#allocation3] sm:$0x3]  }
   0xc   :  { %v7_v4 = vld [vmem:[#allocation3] sm:$0x3]  }
   0xd   :  { %9 = vst.msk [vmem:[#allocation2] ss:$16 sm:$0x3] %vm8_vm0, %v7_v4  }
  0x12   :  { %17 = vrot.lane.b32.xlu0 %v16_v3, %s96_s9 }
  0x7c   :  { %v12_v5 = vpop.permute.xlu0 %11  }
  0x7d   :  { %v24_v6 = vpop.permute.xlu1 %23   ;;  %15 = vst.msk [vmem:[#allocation2 + $0x1] ss:$16 sm:$0x3] %vm8_vm0, %v12_v5  }
  0x7e   :  { %27 = vst.msk [vmem:[#allocation2 + $0x9] ss:$16 sm:$0x3] %vm8_vm0, %v24_v6  }
  0x84   :  { %v30_v7 = vld [vmem:[#allocation2] sm:$0x3]  ;;  %v41_v8 = vld [vmem:[#allocation2 + $0x10] sm:$0x3]  ;;  %v18_v9 = vpop.permute.xlu0 %17  }
  0x85   :  { %33 = vst [vmem:[#allocation0] sm:$0x3] %v30_v7 }
  0x86   :  { %45 = vst [vmem:[#allocation0 + $0x4] sm:$0x3] %v41_v8 }
  0x87   :  { %21 = vst.msk [vmem:[#allocation2 + $0x8] ss:$16 sm:$0x3] %vm8_vm0, %v18_v9  }
  0x8e   :  { %v35_v10 = vld [vmem:[#allocation2 + $0x8] sm:$0x3]  ;;  %v47_v11 = vld [vmem:[#allocation2 + $0x18] sm:$0x3] }
  0x8f   :  { %39 = vst [vmem:[#allocation0 + $0x2] sm:$0x3] %v35_v10 }
  0x90   :  { %51 = vst [vmem:[#allocation0 + $0x6] sm:$0x3] %v47_v11 }
  0x91   :  { %60 = dma.vmem_to_hbm [thread:$0]  %s56_s11, 128, %s58_s1, [#allocation1]  }
  0x92   :  { %92 = dma.done.wait [#allocation1], 128  }
  0x93   :  { %93 = vsyncadd [#allocation1], 4294967168 }
  0x94   :  { %63 = vsyncpa [#allocation1], 1 }

// kernel: _lambda_.1
= control target key start
LH: loop header
LB: loop body
LE: loop exit
PB: predicated region body
PF: predicated region fallthrough
CT: control target
= control target key end

     0   :  { %8 = vsyncpa [#allocation3], 0  ;;  %s1259_s0 = inlined_call_operand.vmem [shape: f32[2,2,136], index: 0, kind: input, shape index: {}]   ;;  %s1260_s1 = inlined_call_operand.hbm [shape: f32[968,384], index: 1, kind: input, shape index: {}]   ;;  %s1261_s2 = inlined_call_operand.hbm [shape: f32[1,2048], index: 2, kind: input, shape index: {}]   ;;  %s1262_s3 = inlined_call_operand.vmem [shape: f32[2,1,128], index: 3, kind: output, shape index: {}]  }
   0x1   :  { %s16_s14 = sshll.u32 %s1260_s1, 4  ;;  %s17_s14 = int_to_ptr.hbm [resolvable:$true] %s16_s14 }
   0x2   :  { %9 = vsyncpa [#allocation5], 0  ;;  %s1143_s15 = smov [#allocation2]   ;;  %s30_s19 = sshll.u32 %s1261_s2, 4  ;;  %s31_s19 = int_to_ptr.hbm [resolvable:$true] %s30_s19 }
   0x3   :  { %s18_s16 = sshll.u32 %s1143_s15, 4  ;;  %s1144_s20 = smov 384   ;;  %s19_s16 = int_to_ptr.vmem [resolvable:$true] %s18_s16 }
   0x4   :  { %s1145_s21 = smov 24   ;;  %s1146_s22 = smov [#allocation4]  }
   0x5   :  { %24 = dma.hbm_to_vmem [thread:$0]  %s17_s14, 46464, %s19_s16, [#allocation3], %s1144_s20, %s1144_s20, %s1145_s21  }
   0x6   :  { %s32_s23 = sshll.u32 %s1146_s22, 4  ;;  %s33_s23 = int_to_ptr.vmem [resolvable:$true] %s32_s23 }
   0x7   :  { %35 = dma.hbm_to_vmem [thread:$0]  %s31_s19, 256, %s33_s23, [#allocation5]  }
   0x8   :  { %1139 = dma.done.wait [#allocation3], 46464  }
   0x9   :  { %1140 = vsyncadd [#allocation3], 4294920832 }
   0xa   :  { %1141 = dma.done.wait [#allocation5], 256  }
   0xb   :  { %1142 = vsyncadd [#allocation5], 4294967040  ;;  %v68_v0 = vld [vmem:[#allocation2 + $0x168] sm:$0xff]  ;;  %v67_v1 = vld [vmem:[#allocation2 + $0x150] sm:$0xff]  ;;  %vm82_vm0 = vcmask 64512   ;;  %vm283_vm5 = vcmask 392192  }
   0xc   :  { %85 = vmatpush.msra.mxu0 %v68_v0  ;;  %v66_v2 = vld [vmem:[#allocation2 + $0x138] sm:$0xff]  ;;  %v65_v3 = vld [vmem:[#allocation2 + $0x120] sm:$0xff]  ;;  %v64_v4 = vld [vmem:[#allocation2 + $0x108] sm:$0xff]  ;;  %s1149_s30 = smov 32   ;;  %vm440_vm14 = vcmask 261120   ;;  %s1150_s4 = smov 48  }
   0xd   :  { %v44_v5 = vld [vmem:[%s1259_s0] ss:$2 sm:$0x3]  ;;  %v69_v6 = vld [vmem:[#allocation2 + $0x180] sm:$0xff]  ;;  %v157_v12 = vld [vmem:[#allocation2 + $0x308] sm:$0xff]  ;;  %s1151_s5 = smov 96  }
   0xe   :  { %86 = vmatpush.msra.mxu0 %v67_v1  ;;  %v1012_v7 = vld [vmem:[%s1259_s0 + $0x4] ss:$2 sm:$0x3]  ;;  %v1013_v8 = vld [vmem:[%s1259_s0 + $0x1] ss:$2 sm:$0x3]  ;;  %120 = vmatpush.msra.mxu1 %v69_v6 }
   0xf   :  { %v1014_v9 = vld [vmem:[%s1259_s0 + $0x5] ss:$2 sm:$0x3]  ;;  %v51_v10 = vadd.f32 %v1013_v8, %v44_v5  ;;  %v156_v11 = vld [vmem:[#allocation2 + $0x300] sm:$0xff]  ;;  %v63_v13 = vld [vmem:[#allocation2 + $0xf0] sm:$0xff]  ;;  %184 = vmatpush.msra.mxu3 %v157_v12  ;;  %s1148_s0 = smov 64  }
  0x10   :  { %87 = vmatpush.msra.mxu0 %v66_v2  ;;  %v52_v14 = vadd.f32 %v1014_v9, %v1012_v7  ;;  %164 = vmatpush.msra.mxu2 %v156_v11  ;;  %v154_v15 = vld [vmem:[#allocation2 + $0x2e8] sm:$0xff]  ;;  %v155_v16 = vld [vmem:[#allocation2 + $0x2f0] sm:$0xff]  ;;  %v153_v18 = vld [vmem:[#allocation2 + $0x2d8] sm:$0xff] }
  0x11   :  { %76 = vst [vmem:[#allocation1] ss:$9 sm:$0xff] %v51_v10  ;;  %v152_v17 = vld [vmem:[#allocation2 + $0x2d0] sm:$0xff]  ;;  %v62_v19 = vld [vmem:[#allocation2 + $0xd8] sm:$0xff]  ;;  %185 = vmatpush.msra.mxu3 %v155_v16  ;;  %v151_v21 = vld [vmem:[#allocation2 + $0x2c0] sm:$0xff] }
  0x12   :  { %88 = vmatpush.msra.mxu0 %v65_v3  ;;  %78 = vst [vmem:[#allocation1 + $0x1] ss:$9 sm:$0xff] %v52_v14  ;;  %165 = vmatpush.msra.mxu2 %v154_v15  ;;  %v150_v20 = vld [vmem:[#allocation2 + $0x2b8] sm:$0xff]  ;;  %v61_v22 = vld [vmem:[#allocation2 + $0xc0] sm:$0xff]  ;;  %v149_v24 = vld [vmem:[#allocation2 + $0x2a8] sm:$0xff] }
  0x13   :  { %186 = vmatpush.msra.mxu3 %v153_v18  ;;  %v148_v23 = vld [vmem:[#allocation2 + $0x2a0] sm:$0xff]  ;;  %v60_v25 = vld [vmem:[#allocation2 + $0xa8] sm:$0xff]  ;;  %v59_v26 = vld [vmem:[#allocation2 + $0x90] sm:$0xff] }
  0x14   :  { %89 = vmatpush.msra.mxu0 %v64_v4  ;;  %166 = vmatpush.msra.mxu2 %v152_v17  ;;  %v146_v27 = vld [vmem:[#allocation2 + $0x288] sm:$0xff]  ;;  %v147_v28 = vld [vmem:[#allocation2 + $0x290] sm:$0xff]  ;;  %v58_v31 = vld [vmem:[#allocation2 + $0x78] sm:$0xff] }
  0x15   :  { %187 = vmatpush.msra.mxu3 %v151_v21  ;;  %v144_v30 = vld [vmem:[#allocation2 + $0x270] sm:$0xff]  ;;  %v145_v32 = vld [vmem:[#allocation2 + $0x278] sm:$0xff]  ;;  %v57_v34 = vld [vmem:[#allocation2 + $0x60] sm:$0xff] }
  0x16   :  { %90 = vmatpush.msra.mxu0 %v63_v13  ;;  %167 = vmatpush.msra.mxu2 %v150_v20  ;;  %v142_v33 = vld [vmem:[#allocation2 + $0x258] sm:$0xff]  ;;  %v143_v35 = vld [vmem:[#allocation2 + $0x260] sm:$0xff]  ;;  %v56_v37 = vld [vmem:[#allocation2 + $0x48] sm:$0xff] }
  0x17   :  { %188 = vmatpush.msra.mxu3 %v149_v24  ;;  %v140_v36 = vld [vmem:[#allocation2 + $0x240] sm:$0xff]  ;;  %v141_v38 = vld [vmem:[#allocation2 + $0x248] sm:$0xff]  ;;  %v55_v40 = vld [vmem:[#allocation2 + $0x30] sm:$0xff] }
  0x18   :  { %91 = vmatpush.msra.mxu0 %v62_v19  ;;  %168 = vmatpush.msra.mxu2 %v148_v23  ;;  %v138_v39 = vld [vmem:[#allocation2 + $0x228] sm:$0xff]  ;;  %v139_v41 = vld [vmem:[#allocation2 + $0x230] sm:$0xff]  ;;  %v54_v43 = vld [vmem:[#allocation2 + $0x18] sm:$0xff] }
  0x19   :  { %v80_v29 = vld [vmem:[#allocation1 + $0x9] sm:$0xff]  ;;  %189 = vmatpush.msra.mxu3 %v147_v28  ;;  %v136_v42 = vld [vmem:[#allocation2 + $0x210] sm:$0xff]  ;;  %v137_v44 = vld [vmem:[#allocation2 + $0x218] sm:$0xff] }
  0x1a   :  { %92 = vmatpush.msra.mxu0 %v61_v22  ;;  %1015 = vmatmul.msk.f32.vlgmr.msra.gmra.mxu1 %vm82_vm0, %v80_v29  ;;  %v134_v45 = vld [vmem:[#allocation2 + $0x1f8] sm:$0xff]  ;;  %v53_v46 = vld [vmem:[#allocation2] sm:$0xff]  ;;  %v133_v50 = vld [vmem:[#allocation2 + $0x1e8] sm:$0xff] }
  0x1b   :  { %169 = vmatpush.msra.mxu2 %v146_v27  ;;  %190 = vmatpush.msra.mxu3 %v145_v32  ;;  %v135_v47 = vld [vmem:[#allocation2 + $0x200] sm:$0xff]  ;;  %v79_v48 = vld [vmem:[#allocation1] sm:$0xff]  ;;  %v130_v51 = vld [vmem:[#allocation2 + $0x1c8] sm:$0xff] }
  0x1c   :  { %93 = vmatpush.msra.mxu0 %v60_v25  ;;  %v132_v49 = vld [vmem:[#allocation2 + $0x1e0] sm:$0xff]  ;;  %v131_v52 = vld [vmem:[#allocation2 + $0x1d0] sm:$0xff]  ;;  %v129_v54 = vld [vmem:[#allocation2 + $0x1b8] sm:$0xff] }
  0x1d   :  { %170 = vmatpush.msra.mxu2 %v144_v30  ;;  %191 = vmatpush.msra.mxu3 %v143_v35  ;;  %v128_v53 = vld [vmem:[#allocation2 + $0x1b0] sm:$0xff]  ;;  %v126_v55 = vld [vmem:[#allocation2 + $0x198] sm:$0xff]  ;;  %v127_v56 = vld [vmem:[#allocation2 + $0x1a0] sm:$0xff] }
  0x1e   :  { %94 = vmatpush.msra.mxu0 %v59_v26  ;;  %v1046_v57 = vld [vmem:[#allocation4] ss:$0 sm:$0xff]  ;;  %v239_v63 = vld [vmem:[#allocation2 + $0x480] sm:$0xff]  ;;  %v238_v0 = vld [vmem:[#allocation2 + $0x468] sm:$0xff] }
  0x1f   :  { %171 = vmatpush.msra.mxu2 %v142_v33  ;;  %192 = vmatpush.msra.mxu3 %v141_v38  ;;  %v237_v1 = vld [vmem:[#allocation2 + $0x450] sm:$0xff]  ;;  %v236_v2 = vld [vmem:[#allocation2 + $0x438] sm:$0xff]  ;;  %v235_v3 = vld [vmem:[#allocation2 + $0x420] sm:$0xff] }
  0x20   :  { %95 = vmatpush.msra.mxu0 %v58_v31  ;;  %244 = vmatpush.msrb.mxu1 %v239_v63  ;;  %v234_v4 = vld [vmem:[#allocation2 + $0x408] sm:$0xff]  ;;  %v233_v5 = vld [vmem:[#allocation2 + $0x3f0] sm:$0xff]  ;;  %v232_v6 = vld [vmem:[#allocation2 + $0x3d8] sm:$0xff] }
  0x21   :  { %172 = vmatpush.msra.mxu2 %v140_v36  ;;  %193 = vmatpush.msra.mxu3 %v139_v41  ;;  %v231_v7 = vld [vmem:[#allocation2 + $0x3c0] sm:$0xff]  ;;  %v230_v8 = vld [vmem:[#allocation2 + $0x3a8] sm:$0xff]  ;;  %v229_v9 = vld [vmem:[#allocation2 + $0x390] sm:$0xff] }
  0x22   :  { %96 = vmatpush.msra.mxu0 %v57_v34  ;;  %245 = vmatpush.msrb.mxu1 %v238_v0  ;;  %v228_v10 = vld [vmem:[#allocation2 + $0x378] sm:$0xff]  ;;  %v227_v11 = vld [vmem:[#allocation2 + $0x360] sm:$0xff]  ;;  %v226_v12 = vld [vmem:[#allocation2 + $0x348] sm:$0xff] }
  0x23   :  { %173 = vmatpush.msra.mxu2 %v138_v39  ;;  %194 = vmatpush.msra.mxu3 %v137_v44  ;;  %v158_v13 = vld [vmem:[#allocation4 + $0x1] sm:$0x3]  ;;  %v225_v14 = vld [vmem:[#allocation2 + $0x330] sm:$0xff]  ;;  %v274_v22 = vld [vmem:[#allocation2 + $0x500] sm:$0xff] }
  0x24   :  { %97 = vmatpush.msra.mxu0 %v56_v37  ;;  %246 = vmatpush.msrb.mxu1 %v237_v1  ;;  %v161_v15 = vperm.slane %v158_v13, 1  ;;  %v224_v16 = vld [vmem:[#allocation2 + $0x318] sm:$0xff]  ;;  %v275_v19 = vld [vmem:[#allocation2 + $0x510] sm:$0xff]  ;;  %v271_v24 = vld [vmem:[#allocation2 + $0x4e0] sm:$0xff]  ;;  %v160_v32 = vperm.slane %v158_v13, 0 }
  0x25   :  { %174 = vmatpush.msra.mxu2 %v136_v42  ;;  %195 = vmatpush.msra.mxu3 %v135_v47  ;;  %v276_v20 = vld [vmem:[#allocation2 + $0x518] sm:$0xff]  ;;  %v272_v25 = vld [vmem:[#allocation2 + $0x4e8] sm:$0xff]  ;;  %v267_v44 = vld [vmem:[#allocation2 + $0x4b0] sm:$0xff] }
  0x26   :  { %98 = vmatpush.msra.mxu0 %v55_v40  ;;  %247 = vmatpush.msrb.mxu1 %v236_v2  ;;  %v273_v21 = vld [vmem:[#allocation2 + $0x4f8] sm:$0xff]  ;;  %v269_v42 = vld [vmem:[#allocation2 + $0x4c8] sm:$0xff]  ;;  %v266_v47 = vld [vmem:[#allocation2 + $0x4a0] sm:$0xff] }
  0x27   :  { %175 = vmatpush.msra.mxu2 %v134_v45  ;;  %196 = vmatpush.msra.mxu3 %v133_v50  ;;  %v268_v45 = vld [vmem:[#allocation2 + $0x4b8] sm:$0xff]  ;;  %v354_v63 = vld [vmem:[#allocation2 + $0x560] sm:$0xff]  ;;  %v355_v0 = vld [vmem:[#allocation2 + $0x568] sm:$0xff] }
  0x28   :  { %99 = vmatpush.msra.mxu0 %v54_v43  ;;  %248 = vmatpush.msrb.mxu1 %v235_v3  ;;  %v270_v43 = vld [vmem:[#allocation2 + $0x4d0] sm:$0xff]  ;;  %v438_v1 = vld [vmem:[#allocation2 + $0x5e8] sm:$0xff]  ;;  %v350_v2 = vld [vmem:[#allocation2 + $0x540] sm:$0xff] }
  0x29   :  { %176 = vmatpush.msra.mxu2 %v132_v49  ;;  %197 = vmatpush.msra.mxu3 %v131_v52  ;;  %v362_v52 = vld [vmem:[#allocation2 + $0x5a0] sm:$0xff]  ;;  %v351_v3 = vld [vmem:[#allocation2 + $0x548] sm:$0xff]  ;;  %v436_v13 = vld [vmem:[#allocation2 + $0x5b8] sm:$0xff] }
  0x2a   :  { %100 = vmatpush.msra.mxu0 %v53_v46  ;;  %249 = vmatpush.msrb.mxu1 %v234_v4  ;;  %v265_v46 = vld [vmem:[#allocation2 + $0x498] sm:$0xff] }
  0x2b   :  { %101 = vmatmul.f32.vlgmr.msra.gmra.mxu0 %v79_v48  ;;  %177 = vmatpush.msra.mxu2 %v130_v51  ;;  %v1047_v48 = vld [vmem:[#allocation4 + $0x3] ss:$0 sm:$0xff]  ;;  %v277_v4 = vld [vmem:[#allocation4 + $0x4] sm:$0x3] }
  0x2c   :  { %198 = vmatpush.msra.mxu3 %v129_v54  ;;  %250 = vmatpush.msrb.mxu1 %v233_v5  ;;  %v364_v54 = vld [vmem:[#allocation2 + $0x5b0] sm:$0xff] }
  0x2d   :  { %178 = vmatpush.msra.mxu2 %v128_v53  ;;  %297 = vmatpush.msrb.mxu0 %v275_v19  ;;  %v363_v53 = vld [vmem:[#allocation2 + $0x5a8] sm:$0xff]  ;;  %v352_v5 = vld [vmem:[#allocation2 + $0x550] sm:$0xff] }
  0x2e   :  { %199 = vmatpush.msra.mxu3 %v127_v56  ;;  %251 = vmatpush.msrb.mxu1 %v232_v6  ;;  %v360_v56 = vld [vmem:[#allocation2 + $0x590] sm:$0xff] }
  0x2f   :  { %179 = vmatpush.msra.mxu2 %v126_v55  ;;  %298 = vmatpush.msrb.mxu0 %v273_v21  ;;  %v359_v55 = vld [vmem:[#allocation2 + $0x588] sm:$0xff]  ;;  %v437_v6 = vld [vmem:[#allocation2 + $0x5d0] sm:$0xff] }
  0x30   :  { %252 = vmatpush.msrb.mxu1 %v231_v7  ;;  %386 = vmatpush.msrb.mxu3 %v362_v52  ;;  %v280_v7 = vperm.slane %v277_v4, 1 }
  0x31   :  { %317 = vmatpush.msrb.mxu2 %v276_v20  ;;  %299 = vmatpush.msrb.mxu0 %v271_v24 }
  0x32   :  { %253 = vmatpush.msrb.mxu1 %v230_v8  ;;  %387 = vmatpush.msrb.mxu3 %v359_v55  ;;  %v347_v8 = vld [vmem:[#allocation2 + $0x528] sm:$0xff] }
  0x33   :  { %318 = vmatpush.msrb.mxu2 %v274_v22  ;;  %300 = vmatpush.msrb.mxu0 %v269_v42  ;;  %v279_v22 = vperm.slane %v277_v4, 0 }
  0x34   :  { %254 = vmatpush.msrb.mxu1 %v229_v9  ;;  %v348_v9 = vld [vmem:[#allocation2 + $0x530] sm:$0xff] }
  0x35   :  { %319 = vmatpush.msrb.mxu2 %v272_v25  ;;  %301 = vmatpush.msrb.mxu0 %v267_v44 }
  0x36   :  { %255 = vmatpush.msrb.mxu1 %v228_v10  ;;  %v349_v10 = vld [vmem:[#allocation2 + $0x538] sm:$0xff] }
  0x37   :  { %320 = vmatpush.msrb.mxu2 %v270_v43  ;;  %302 = vmatpush.msrb.mxu0 %v265_v46 }
  0x38   :  { %256 = vmatpush.msrb.mxu1 %v227_v11 }
  0x39   :  { %321 = vmatpush.msrb.mxu2 %v268_v45  ;;  %426 = vmatpush.msra.mxu0 %v364_v54 }
  0x3a   :  { %257 = vmatpush.msrb.mxu1 %v226_v12 }
  0x3b   :  { %322 = vmatpush.msrb.mxu2 %v266_v47 }
  0x3c   :  { %258 = vmatpush.msrb.mxu1 %v225_v14 }
  0x3e   :  { %259 = vmatpush.msrb.mxu1 %v224_v16 }
  0x40   :  { %406 = vmatpush.msra.mxu1 %v363_v53 }
  0x42   :  { %407 = vmatpush.msra.mxu1 %v360_v56 }
  0x97   :  { %v122_v59 = vpop.f32.mrf.mxu1 }
  0xa8   :  { %v102_v58 = vpop.f32.mrf.mxu0 }
  0xa9   :  { %v103_v60 = vadd.f32 %v1046_v57, %v102_v58  ;;  %v361_v57 = vld [vmem:[#allocation2 + $0x598] sm:$0xff]  ;;  %v356_v58 = vld [vmem:[#allocation2 + $0x570] sm:$0xff] }
  0xaa   :  { %427 = vmatpush.msra.mxu0 %v361_v57  ;;  %388 = vmatpush.msrb.mxu3 %v356_v58 }
  0xab   :  { %v123_v61 = vadd.f32 %v122_v59, %v103_v60  ;;  %v357_v59 = vld [vmem:[#allocation2 + $0x578] sm:$0xff]  ;;  %v358_v60 = vld [vmem:[#allocation2 + $0x580] sm:$0xff] }
  0xac   :  { %408 = vmatpush.msra.mxu1 %v357_v59  ;;  %428 = vmatpush.msra.mxu0 %v358_v60 }
  0xad   :  { %v125_v62 = vmax.f32 %v123_v61, 0.0  ;;  %v1195_v61 = vld [vmem:[#allocation2 + $0x600] sm:$0xff] }
  0xae   :  { %409 = vmatpush.msra.mxu1 %v354_v63  ;;  %429 = vmatpush.msra.mxu0 %v355_v0 }
  0xaf   :  { %180 = vmatmul.f32.vlgmr.msra.gmra.mxu2 %v125_v62  ;;  %200 = vmatmul.f32.vlgmr.msra.gmra.mxu3 %v125_v62  ;;  %v353_v62 = vld [vmem:[#allocation2 + $0x558] sm:$0xff] }
  0xb0   :  { %456 = vmatpush.msra.mxu2 %v1195_v61  ;;  %389 = vmatpush.msrb.mxu3 %v353_v62 }
  0xb1   :  { %410 = vmatpush.msra.mxu1 %v351_v3  ;;  %430 = vmatpush.msra.mxu0 %v352_v5 }
  0xb2   :  { %457 = vmatpush.msra.mxu2 %v438_v1  ;;  %390 = vmatpush.msrb.mxu3 %v350_v2 }
  0xb3   :  { %411 = vmatpush.msra.mxu1 %v348_v9  ;;  %431 = vmatpush.msra.mxu0 %v349_v10 }
  0xb4   :  { %458 = vmatpush.msra.mxu2 %v437_v6  ;;  %391 = vmatpush.msrb.mxu3 %v347_v8 }
  0xb6   :  { %459 = vmatpush.msra.mxu2 %v436_v13 }
 0x132   :  { %v201_v17 = vpop.f32.mrf.mxu3  ;;  %v181_v35 = vpop.f32.mrf.mxu2 }
 0x133   :  { %v202_v18 = vadd.f32 %v201_v17, %v161_v15  ;;  %v182_v38 = vadd.f32 %v181_v35, %v160_v32  ;;  %v1147_v15 = vmov 0.0   ;;  %v1208_v32 = vld [vmem:[#allocation4 + $0x6] sm:$0x7] }
 0x134   :  { %v368_v63 = vperm.slane %v1208_v32, 1 }
 0x135   :  { %v1016_v23 = vmul.f32 -1.442695, %v202_v18 }
 0x137   :  { %1051 = vpow2.f32 %v1016_v23 }
 0x13d   :  { %v1052_v26 = vpop.eup %1051 }
 0x13e   :  { %v207_v27 = vadd.f32 1.0, %v1052_v26 }
 0x140   :  { %1053 = vrcp.f32 %v207_v27  ;;  %v219_v31 = vand.u32 2147483648, %v207_v27  ;;  %v217_v34 = vand.u32 2147483647, %v207_v27  ;;  %vm213_vm2 = vweird.f32 %v207_v27 }
 0x142   :  { %v220_v37 = vor.u32 1.1754944e-38, %v219_v31  ;;  %vm218_vm4 = vcmp.eq.f32.partialorder %v217_v34, 8.507059e+37 }
 0x146   :  { %v1054_v28 = vpop.eup %1053 }
 0x147   :  { %v209_v29 = vmul.f32 %v1054_v28, %v207_v27  ;;  %vm214_vm1 = vweird.f32 %v1054_v28 }
 0x148   :  { %vm215_vm3 = vmor %vm213_vm2, %vm214_vm1 }
 0x149   :  { %v210_v30 = vsub.f32 1.0, %v209_v29 }
 0x14b   :  { %v211_v33 = vmul.f32 %v1054_v28, %v210_v30 }
 0x14d   :  { %v212_v36 = vadd.f32 %v1054_v28, %v211_v33  ;;  %v367_v33 = vperm.slane %v1208_v32, 0 }
 0x14f   :  { %v216_v39 = vsel %vm215_vm3, %v1054_v28, %v212_v36 }
 0x150   :  { %v221_v40 = vsel %vm218_vm4, %v220_v37, %v216_v39 }
 0x151   :  { %v1190_v41 = vmul.f32 %v221_v40, %v182_v38 }
 0x153   :  { %260 = vmatmul.f32.vlgmr.msrb.gmra.mxu1 %v1190_v41 }
 0x154   :  { %519 = vmatpush.msrb.mxu1 %v1195_v61 }
 0x156   :  { %520 = vmatpush.msrb.mxu1 %v438_v1 }
 0x158   :  { %521 = vmatpush.msrb.mxu1 %v437_v6 }
 0x15a   :  { %522 = vmatpush.msrb.mxu1 %v436_v13 }
 0x1d0   :  { %v261_v49 = vpop.f32.mrf.mxu1 }
 0x1d1   :  { %v262_v50 = vadd.f32 %v1047_v48, %v261_v49 }
 0x1d3   :  { %v264_v51 = vmax.f32 %v262_v50, 0.0 }
 0x1d5   :  { %1017 = vmatmul.msk.f32.vlgmr.msrb.gmra.mxu0 %vm283_vm5, %v264_v51  ;;  %1018 = vmatmul.msk.f32.vlgmr.msrb.gmra.mxu2 %vm283_vm5, %v264_v51 }
 0x1dd   :  { %460 = vmatmul.f32.vlgmr.msra.gmra.mxu2 %v1147_v15 }
 0x252   :  { %v304_v25 = vpop.f32.mrf.mxu0 }
 0x253   :  { %v305_v28 = vadd.f32 %v304_v25, %v279_v22 }
 0x258   :  { %v324_v11 = vpop.f32.mrf.mxu2 }
 0x259   :  { %v325_v12 = vadd.f32 %v324_v11, %v280_v7 }
 0x25b   :  { %v1019_v14 = vmul.f32 -1.442695, %v325_v12 }
 0x25d   :  { %1055 = vpow2.f32 %v1019_v14 }
 0x260   :  { %v461_v35 = vpop.f32.mrf.mxu2 }
 0x263   :  { %v1056_v16 = vpop.eup %1055 }
 0x264   :  { %v330_v17 = vadd.f32 1.0, %v1056_v16 }
 0x266   :  { %1057 = vrcp.f32 %v330_v17  ;;  %v342_v21 = vand.u32 2147483648, %v330_v17  ;;  %v340_v24 = vand.u32 2147483647, %v330_v17  ;;  %vm336_vm7 = vweird.f32 %v330_v17 }
 0x268   :  { %v343_v27 = vor.u32 1.1754944e-38, %v342_v21  ;;  %vm341_vm9 = vcmp.eq.f32.partialorder %v340_v24, 8.507059e+37 }
 0x26c   :  { %v1058_v18 = vpop.eup %1057 }
 0x26d   :  { %v332_v19 = vmul.f32 %v1058_v18, %v330_v17  ;;  %vm337_vm6 = vweird.f32 %v1058_v18 }
 0x26e   :  { %vm338_vm8 = vmor %vm336_vm7, %vm337_vm6 }
 0x26f   :  { %v333_v20 = vsub.f32 1.0, %v332_v19 }
 0x271   :  { %v334_v23 = vmul.f32 %v1058_v18, %v333_v20 }
 0x273   :  { %v335_v26 = vadd.f32 %v1058_v18, %v334_v23 }
 0x275   :  { %v339_v29 = vsel %vm338_vm8, %v1058_v18, %v335_v26  ;;  %v369_v26 = vperm.slane %v1208_v32, 2  ;;  %vm637_vm8 = vcmask 523264  }
 0x276   :  { %v344_v30 = vsel %vm341_vm9, %v343_v27, %v339_v29  ;;  %vm655_vm9 = vcmask 785408  }
 0x277   :  { %v1199_v31 = vmul.f32 %v344_v30, %v305_v28 }
 0x279   :  { %1020 = vmatmul.msk.f32.vlgmr.msrb.gmra.mxu3 %vm283_vm5, %v1199_v31  ;;  %1021 = vmatmul.msk.f32.vlgmr.msra.gmra.mxu1 %vm283_vm5, %v1199_v31 }
 0x27a   :  { %1022 = vmatmul.msk.f32.vlgmr.msra.gmra.mxu0 %vm283_vm5, %v1199_v31  ;;  %582 = vmatpush.msra.mxu1 %v1195_v61 }
 0x27c   :  { %583 = vmatpush.msra.mxu1 %v438_v1 }
 0x27e   :  { %584 = vmatpush.msra.mxu1 %v437_v6 }
 0x280   :  { %585 = vmatpush.msra.mxu1 %v436_v13 }
 0x2f6   :  { %v413_v62 = vpop.f32.mrf.mxu1 }
 0x2f7   :  { %v414_v0 = vadd.f32 %v413_v62, %v368_v63  ;;  %v433_v27 = vpop.f32.mrf.mxu0  ;;  %v641_v62 = vld [vmem:[#allocation2 + $0x648] sm:$0xff]  ;;  %v639_v63 = vld [vmem:[#allocation2 + $0x618] sm:$0xff] }
 0x2f8   :  { %v434_v28 = vadd.f32 %v433_v27, %v369_v26  ;;  %v690_v26 = vld [vmem:[#allocation2 + $0x788] sm:$0xff]  ;;  %v689_v27 = vld [vmem:[#allocation2 + $0x780] sm:$0xff] }
 0x2fc   :  { %v393_v34 = vpop.f32.mrf.mxu3 }
 0x2fd   :  { %v394_v36 = vadd.f32 %v393_v34, %v367_v33 }
 0x2ff   :  { %v464_v37 = vadd.f32 %v461_v35, %v394_v36 }
 0x301   :  { %1059 = vtanh.f32 %v464_v37  ;;  %v1023_v39 = vmul.f32 -1.442695, %v464_v37 }
 0x303   :  { %1061 = vpow2.f32 %v1023_v39 }
 0x307   :  { %v1060_v38 = vpop.eup %1059 }
 0x308   :  { %487 = vrot.lane.b32.xlu0 %v1060_v38, %s1148_s0 }
 0x309   :  { %v1062_v40 = vpop.eup %1061 }
 0x30a   :  { %v468_v42 = vadd.f32 1.0, %v1062_v40 }
 0x30c   :  { %1063 = vrcp.f32 %v468_v42  ;;  %v480_v48 = vand.u32 2147483648, %v468_v42  ;;  %vm474_vm11 = vweird.f32 %v468_v42  ;;  %v478_v49 = vand.u32 2147483647, %v468_v42 }
 0x30e   :  { %v481_v51 = vor.u32 1.1754944e-38, %v480_v48  ;;  %vm479_vm13 = vcmp.eq.f32.partialorder %v478_v49, 8.507059e+37 }
 0x312   :  { %v1064_v43 = vpop.eup %1063 }
 0x313   :  { %v470_v44 = vmul.f32 %v1064_v43, %v468_v42  ;;  %vm475_vm10 = vweird.f32 %v1064_v43 }
 0x314   :  { %vm476_vm12 = vmor %vm474_vm11, %vm475_vm10 }
 0x315   :  { %v471_v45 = vsub.f32 1.0, %v470_v44 }
 0x317   :  { %v472_v46 = vmul.f32 %v1064_v43, %v471_v45 }
 0x319   :  { %v473_v47 = vadd.f32 %v1064_v43, %v472_v46 }
 0x31b   :  { %v477_v50 = vsel %vm476_vm12, %v1064_v43, %v473_v47 }
 0x31c   :  { %v482_v53 = vsel %vm479_vm13, %v481_v51, %v477_v50 }
 0x31d   :  { %v485_v55 = vmul.f32 0.0, %v482_v53 }
 0x37a   :  { %v488_v52 = vpop.permute.xlu0 %487 }
 0x37b   :  { %v490_v54 = vmul.f32 %v488_v52, %v482_v53  ;;  %v650_v52 = vld [vmem:[#allocation2 + $0x720] sm:$0xff] }
 0x37c   :  { %663 = vmatpush.msrb.mxu2 %v650_v52  ;;  %v1246_v52 = vld [vmem:[#allocation4 + $0xa] sm:$0x3] }
 0x37d   :  { %492 = vrot.lane.b32.xlu0 %v490_v54, %s1149_s30  ;;  %v648_v54 = vld [vmem:[#allocation2 + $0x6f0] sm:$0xff] }
 0x3ef   :  { %v493_v56 = vpop.permute.xlu0 %492 }
 0x3f0   :  { %v495_v57 = vadd.f32 %v493_v56, %v485_v55  ;;  %v647_v55 = vld [vmem:[#allocation2 + $0x6d8] sm:$0xff]  ;;  %v646_v56 = vld [vmem:[#allocation2 + $0x6c0] sm:$0xff] }
 0x3f2   :  { %1065 = vtanh.f32 %v495_v57 }
 0x3f8   :  { %v1066_v58 = vpop.eup %1065 }
 0x3f9   :  { %498 = vrot.lane.b32.xlu1 %v1066_v58, %s1148_s0  ;;  %v644_v58 = vld [vmem:[#allocation2 + $0x690] sm:$0xff] }
 0x46b   :  { %v499_v59 = vpop.permute.xlu1 %498 }
 0x46c   :  { %v501_v60 = vmul.f32 %v499_v59, %v482_v53  ;;  %v649_v53 = vld [vmem:[#allocation2 + $0x708] sm:$0xff]  ;;  %v643_v59 = vld [vmem:[#allocation2 + $0x678] sm:$0xff] }
 0x46d   :  { %664 = vmatpush.msrb.mxu2 %v649_v53  ;;  %v710_v53 = vperm.slane %v1246_v52, 1 }
 0x46e   :  { %503 = vrot.lane.b32.xlu1 %v501_v60, %s1149_s30  ;;  %v642_v60 = vld [vmem:[#allocation2 + $0x660] sm:$0xff] }
 0x46f   :  { %665 = vmatpush.msrb.mxu2 %v648_v54  ;;  %v777_v54 = vld [vmem:[#allocation2 + $0x870] sm:$0xff] }
 0x470   :  { %800 = vmatpush.msrb.mxu0 %v777_v54 }
 0x471   :  { %666 = vmatpush.msrb.mxu2 %v647_v55  ;;  %v776_v55 = vld [vmem:[#allocation2 + $0x858] sm:$0xff] }
 0x472   :  { %801 = vmatpush.msrb.mxu0 %v776_v55  ;;  %v969_v55 = vld [vmem:[#allocation2 + $0xae0] sm:$0xff] }
 0x473   :  { %667 = vmatpush.msrb.mxu2 %v646_v56 }
 0x4e0   :  { %v1215_v61 = vpop.permute.xlu1 %503 }
 0x4e1   :  { %1024 = vmatmul.msk.f32.vlgmr.msrb.gmra.mxu1 %vm440_vm14, %v1215_v61 }
 0x55e   :  { %v524_v1 = vpop.f32.mrf.mxu1 }
 0x55f   :  { %v527_v2 = vadd.f32 %v524_v1, %v414_v0  ;;  %v858_v0 = vld [vmem:[#allocation2 + $0xab0] sm:$0xff]  ;;  %v856_v1 = vld [vmem:[#allocation2 + $0xa98] sm:$0xff] }
 0x561   :  { %1067 = vtanh.f32 %v527_v2  ;;  %v1025_v4 = vmul.f32 -1.442695, %v527_v2 }
 0x563   :  { %1069 = vpow2.f32 %v1025_v4  ;;  %v854_v4 = vld [vmem:[#allocation2 + $0xa80] sm:$0xff] }
 0x567   :  { %v1068_v3 = vpop.eup %1067 }
 0x568   :  { %550 = vrot.lane.b32.xlu2 %v1068_v3, %s1148_s0 }
 0x569   :  { %v1070_v5 = vpop.eup %1069 }
 0x56a   :  { %v531_v6 = vadd.f32 1.0, %v1070_v5  ;;  %v852_v5 = vld [vmem:[#allocation2 + $0xa68] sm:$0xff] }
 0x56c   :  { %1071 = vrcp.f32 %v531_v6  ;;  %v543_v12 = vand.u32 2147483648, %v531_v6  ;;  %vm537_vm0 = vweird.f32 %v531_v6  ;;  %v541_v13 = vand.u32 2147483647, %v531_v6 }
 0x56e   :  { %v544_v15 = vor.u32 1.1754944e-38, %v543_v12  ;;  %vm542_vm2 = vcmp.eq.f32.partialorder %v541_v13, 8.507059e+37  ;;  %v705_v12 = vld [vmem:[#allocation2 + $0x840] sm:$0xff]  ;;  %v702_v13 = vld [vmem:[#allocation2 + $0x818] sm:$0xff] }
 0x56f   :  { %720 = vmatpush.msra.mxu3 %v705_v12  ;;  %v829_v12 = vld [vmem:[#allocation2 + $0x950] sm:$0xff] }
 0x572   :  { %v1072_v7 = vpop.eup %1071 }
 0x573   :  { %v533_v8 = vmul.f32 %v1072_v7, %v531_v6  ;;  %vm538_vm15 = vweird.f32 %v1072_v7  ;;  %v850_v6 = vld [vmem:[#allocation2 + $0xa50] sm:$0xff] }
 0x574   :  { %vm539_vm1 = vmor %vm537_vm0, %vm538_vm15 }
 0x575   :  { %v534_v9 = vsub.f32 1.0, %v533_v8  ;;  %v846_v8 = vld [vmem:[#allocation2 + $0xa20] sm:$0xff] }
 0x577   :  { %v535_v10 = vmul.f32 %v1072_v7, %v534_v9  ;;  %v844_v9 = vld [vmem:[#allocation2 + $0xa08] sm:$0xff] }
 0x579   :  { %v536_v11 = vadd.f32 %v1072_v7, %v535_v10  ;;  %v706_v10 = vld [vmem:[#allocation2 + $0x848] sm:$0xff] }
 0x57a   :  { %740 = vmatpush.msrb.mxu1 %v706_v10 }
 0x57b   :  { %v540_v14 = vsel %vm539_vm1, %v1072_v7, %v536_v11  ;;  %v848_v7 = vld [vmem:[#allocation2 + $0xa38] sm:$0xff]  ;;  %v704_v11 = vld [vmem:[#allocation2 + $0x830] sm:$0xff] }
 0x57c   :  { %v545_v17 = vsel %vm542_vm2, %v544_v15, %v540_v14  ;;  %v703_v14 = vld [vmem:[#allocation2 + $0x828] sm:$0xff]  ;;  %741 = vmatpush.msrb.mxu1 %v704_v11  ;;  %v701_v15 = vld [vmem:[#allocation2 + $0x810] sm:$0xff] }
 0x57d   :  { %v548_v19 = vmul.f32 %v545_v17, %v495_v57  ;;  %v645_v57 = vld [vmem:[#allocation2 + $0x6a8] sm:$0xff]  ;;  %721 = vmatpush.msra.mxu3 %v703_v14  ;;  %v827_v14 = vld [vmem:[#allocation2 + $0x938] sm:$0xff] }
 0x57e   :  { %668 = vmatpush.msrb.mxu2 %v645_v57  ;;  %742 = vmatpush.msrb.mxu1 %v702_v13  ;;  %v828_v11 = vld [vmem:[#allocation2 + $0x948] sm:$0xff]  ;;  %v826_v13 = vld [vmem:[#allocation2 + $0x930] sm:$0xff] }
 0x57f   :  { %722 = vmatpush.msra.mxu3 %v701_v15  ;;  %v824_v15 = vld [vmem:[#allocation2 + $0x918] sm:$0xff] }
 0x580   :  { %669 = vmatpush.msrb.mxu2 %v644_v58  ;;  %v842_v58 = vld [vmem:[#allocation2 + $0x9f0] sm:$0xff] }
 0x581   :  { %868 = vmatpush.msra.mxu0 %v842_v58 }
 0x582   :  { %670 = vmatpush.msrb.mxu2 %v643_v59  ;;  %v843_v59 = vld [vmem:[#allocation2 + $0x9f8] sm:$0xff] }
 0x584   :  { %671 = vmatpush.msrb.mxu2 %v642_v60  ;;  %v840_v60 = vld [vmem:[#allocation2 + $0x9d8] sm:$0xff] }
 0x585   :  { %869 = vmatpush.msra.mxu0 %v840_v60 }
 0x586   :  { %672 = vmatpush.msrb.mxu2 %v641_v62  ;;  %v841_v62 = vld [vmem:[#allocation2 + $0x9e0] sm:$0xff] }
 0x5c2   :  { %v551_v16 = vpop.permute.xlu2 %550 }
 0x5c3   :  { %v553_v18 = vmul.f32 %v551_v16, %v545_v17  ;;  %v700_v16 = vld [vmem:[#allocation2 + $0x800] sm:$0xff] }
 0x5c4   :  { %743 = vmatpush.msrb.mxu1 %v700_v16  ;;  %v825_v16 = vld [vmem:[#allocation2 + $0x920] sm:$0xff] }
 0x5c5   :  { %555 = vrot.lane.b32.xlu2 %v553_v18, %s1149_s30  ;;  %v698_v18 = vld [vmem:[#allocation2 + $0x7e8] sm:$0xff] }
 0x5c6   :  { %744 = vmatpush.msrb.mxu1 %v698_v18  ;;  %v823_v18 = vld [vmem:[#allocation2 + $0x908] sm:$0xff] }
 0x61f   :  { %v556_v20 = vpop.permute.xlu2 %555 }
 0x620   :  { %v558_v21 = vadd.f32 %v556_v20, %v548_v19  ;;  %v697_v19 = vld [vmem:[#allocation2 + $0x7e0] sm:$0xff]  ;;  %v696_v20 = vld [vmem:[#allocation2 + $0x7d0] sm:$0xff] }
 0x621   :  { %745 = vmatpush.msrb.mxu1 %v696_v20 }
 0x622   :  { %1073 = vtanh.f32 %v558_v21 }
 0x628   :  { %v1074_v22 = vpop.eup %1073 }
 0x629   :  { %561 = vrot.lane.b32.xlu0 %v1074_v22, %s1148_s0  ;;  %v694_v22 = vld [vmem:[#allocation2 + $0x7b8] sm:$0xff] }
 0x62a   :  { %746 = vmatpush.msrb.mxu1 %v694_v22  ;;  %v821_v22 = vld [vmem:[#allocation2 + $0x8f0] sm:$0xff] }
 0x69b   :  { %v562_v23 = vpop.permute.xlu0 %561 }
 0x69c   :  { %v564_v24 = vmul.f32 %v562_v23, %v545_v17  ;;  %v699_v17 = vld [vmem:[#allocation2 + $0x7f8] sm:$0xff]  ;;  %v693_v23 = vld [vmem:[#allocation2 + $0x7b0] sm:$0xff] }
 0x69d   :  { %723 = vmatpush.msra.mxu3 %v699_v17  ;;  %v822_v17 = vld [vmem:[#allocation2 + $0x900] sm:$0xff] }
 0x69e   :  { %566 = vrot.lane.b32.xlu1 %v564_v24, %s1149_s30 }
 0x69f   :  { %724 = vmatpush.msra.mxu3 %v697_v19 }
 0x710   :  { %v567_v25 = vpop.permute.xlu1 %566 }
 0x711   :  { %1026 = vmatmul.msk.f32.vlgmr.msra.gmra.mxu1 %vm440_vm14, %v567_v25  ;;  %v691_v25 = vld [vmem:[#allocation2 + $0x798] sm:$0xff] }
 0x78e   :  { %v587_v29 = vpop.f32.mrf.mxu1 }
 0x78f   :  { %v590_v30 = vadd.f32 %v587_v29, %v434_v28  ;;  %v688_v28 = vld [vmem:[#allocation2 + $0x770] sm:$0xff]  ;;  %v687_v29 = vld [vmem:[#allocation2 + $0x768] sm:$0xff] }
 0x791   :  { %1075 = vtanh.f32 %v590_v30  ;;  %v1027_v34 = vmul.f32 -1.442695, %v590_v30  ;;  %v686_v30 = vld [vmem:[#allocation2 + $0x758] sm:$0xff] }
 0x793   :  { %1077 = vpow2.f32 %v1027_v34  ;;  %v684_v34 = vld [vmem:[#allocation2 + $0x740] sm:$0xff] }
 0x797   :  { %v1076_v33 = vpop.eup %1075 }
 0x798   :  { %613 = vrot.lane.b32.xlu2 %v1076_v33, %s1148_s0 }
 0x799   :  { %v1078_v35 = vpop.eup %1077 }
 0x79a   :  { %v594_v36 = vadd.f32 1.0, %v1078_v35  ;;  %v859_v35 = vld [vmem:[#allocation2 + $0xab8] sm:$0xff] }
 0x79c   :  { %1079 = vrcp.f32 %v594_v36  ;;  %v606_v42 = vand.u32 2147483648, %v594_v36  ;;  %vm600_vm4 = vweird.f32 %v594_v36  ;;  %v604_v43 = vand.u32 2147483647, %v594_v36 }
 0x79e   :  { %v607_v45 = vor.u32 1.1754944e-38, %v606_v42  ;;  %vm605_vm7 = vcmp.eq.f32.partialorder %v604_v43, 8.507059e+37  ;;  %v855_v42 = vld [vmem:[#allocation2 + $0xa88] sm:$0xff]  ;;  %v683_v43 = vld [vmem:[#allocation2 + $0x738] sm:$0xff] }
 0x7a0   :  { %629 = vrot.lane.b32.xlu2 %v564_v24, %s1148_s0  ;;  %v692_v24 = vld [vmem:[#allocation2 + $0x7a0] sm:$0xff] }
 0x7a1   :  { %747 = vmatpush.msrb.mxu1 %v692_v24  ;;  %v818_v24 = vld [vmem:[#allocation2 + $0x8d0] sm:$0xff] }
 0x7a2   :  { %v1080_v37 = vpop.eup %1079 }
 0x7a3   :  { %v596_v32 = vmul.f32 %v1080_v37, %v594_v36  ;;  %vm601_vm3 = vweird.f32 %v1080_v37  ;;  %748 = vmatpush.msrb.mxu1 %v690_v26 }
 0x7a4   :  { %vm602_vm6 = vmor %vm600_vm4, %vm601_vm3 }
 0x7a5   :  { %v597_v38 = vsub.f32 1.0, %v596_v32  ;;  %749 = vmatpush.msrb.mxu1 %v688_v28 }
 0x7a7   :  { %v598_v39 = vmul.f32 %v1080_v37, %v597_v38  ;;  %750 = vmatpush.msrb.mxu1 %v686_v30  ;;  %v857_v38 = vld [vmem:[#allocation2 + $0xaa0] sm:$0xff] }
 0x7a8   :  { %808 = vrot.lane.b32.xlu2 %v1190_v41, %s1148_s0 }
 0x7a9   :  { %v599_v40 = vadd.f32 %v1080_v37, %v598_v39  ;;  %751 = vmatpush.msrb.mxu1 %v684_v34 }
 0x7ab   :  { %v603_v44 = vsel %vm602_vm6, %v1080_v37, %v599_v40  ;;  %936 = vmatpush.msra.mxu1 %v859_v35  ;;  %v685_v40 = vld [vmem:[#allocation2 + $0x750] sm:$0xff] }
 0x7ac   :  { %v608_v41 = vsel %vm605_vm7, %v607_v45, %v603_v44  ;;  %v851_v44 = vld [vmem:[#allocation2 + $0xa58] sm:$0xff]  ;;  %v849_v45 = vld [vmem:[#allocation2 + $0xa40] sm:$0xff] }
 0x7ad   :  { %v611_v48 = vmul.f32 %v608_v41, %v558_v21  ;;  %v695_v21 = vld [vmem:[#allocation2 + $0x7c8] sm:$0xff]  ;;  %937 = vmatpush.msra.mxu1 %v857_v38  ;;  %v816_v38 = vld [vmem:[#allocation2 + $0x8b8] sm:$0xff] }
 0x7ae   :  { %725 = vmatpush.msra.mxu3 %v695_v21  ;;  %v820_v21 = vld [vmem:[#allocation2 + $0x8e8] sm:$0xff] }
 0x7af   :  { %938 = vmatpush.msra.mxu1 %v855_v42  ;;  %v814_v42 = vld [vmem:[#allocation2 + $0x8a0] sm:$0xff] }
 0x7b0   :  { %726 = vmatpush.msra.mxu3 %v693_v23 }
 0x7b2   :  { %727 = vmatpush.msra.mxu3 %v691_v25  ;;  %v819_v25 = vld [vmem:[#allocation2 + $0x8d8] sm:$0xff] }
 0x7b4   :  { %728 = vmatpush.msra.mxu3 %v689_v27  ;;  %v709_v27 = vperm.slane %v1246_v52, 0  ;;  %v860_v52 = vld [vmem:[#allocation4 + $0xd] sm:$0x3] }
 0x7b5   :  { %v863_v54 = vperm.slane %v860_v52, 1 }
 0x7b6   :  { %729 = vmatpush.msra.mxu3 %v687_v29 }
 0x7b8   :  { %730 = vmatpush.msra.mxu3 %v685_v40  ;;  %v817_v40 = vld [vmem:[#allocation2 + $0x8c0] sm:$0xff] }
 0x7ba   :  { %731 = vmatpush.msra.mxu3 %v683_v43  ;;  %v815_v43 = vld [vmem:[#allocation2 + $0x8a8] sm:$0xff] }
 0x7bc   :  { %908 = vmatpush.msrb.mxu3 %v843_v59 }
 0x7be   :  { %909 = vmatpush.msrb.mxu3 %v841_v62 }
 0x7f2   :  { %v614_v46 = vpop.permute.xlu2 %613 }
 0x7f3   :  { %v616_v47 = vmul.f32 %v614_v46, %v608_v41  ;;  %v847_v46 = vld [vmem:[#allocation2 + $0xa28] sm:$0xff] }
 0x7f5   :  { %618 = vrot.lane.b32.xlu0 %v616_v47, %s1149_s30  ;;  %v1048_v47 = vld [vmem:[#allocation4 + $0x9] ss:$0 sm:$0xff] }
 0x7fa   :  { %v630_v33 = vpop.permute.xlu2 %629 }
 0x7fb   :  { %v636_v36 = vsel %vm440_vm14, %v1215_v61, %v630_v33  ;;  %v853_v61 = vld [vmem:[#allocation2 + $0xa70] sm:$0xff]  ;;  %vm782_vm14 = vcmask 130048  }
 0x7fc   :  { %939 = vmatpush.msra.mxu1 %v853_v61  ;;  %v812_v61 = vld [vmem:[#allocation2 + $0x888] sm:$0xff] }
 0x7fe   :  { %940 = vmatpush.msra.mxu1 %v851_v44  ;;  %v813_v44 = vld [vmem:[#allocation2 + $0x890] sm:$0xff] }
 0x800   :  { %941 = vmatpush.msra.mxu1 %v849_v45  ;;  %v1049_v45 = vld [vmem:[#allocation4 + $0xc] ss:$0 sm:$0xff] }
 0x802   :  { %v1237_v39 = vpop.permute.xlu2 %808  ;;  %942 = vmatpush.msra.mxu1 %v847_v46 }
 0x867   :  { %v619_v49 = vpop.permute.xlu0 %618 }
 0x868   :  { %v621_v50 = vadd.f32 %v619_v49, %v611_v48 }
 0x86a   :  { %1081 = vtanh.f32 %v621_v50 }
 0x870   :  { %v1082_v51 = vpop.eup %1081 }
 0x871   :  { %624 = vrot.lane.b32.xlu1 %v1082_v51, %s1148_s0 }
 0x879   :  { %679 = vrot.lane.b32.xlu1 %v1199_v31, %s1150_s4  ;;  %v640_v31 = vld [vmem:[#allocation2 + $0x630] sm:$0xff] }
 0x87a   :  { %673 = vmatpush.msrb.mxu2 %v640_v31 }
 0x87c   :  { %674 = vmatpush.msrb.mxu2 %v639_v63  ;;  %v838_v63 = vld [vmem:[#allocation2 + $0x9c0] sm:$0xff] }
 0x87d   :  { %870 = vmatpush.msra.mxu0 %v838_v63 }
 0x87e   :  { %896 = vmatpush.msra.mxu2 %v858_v0  ;;  %v839_v0 = vld [vmem:[#allocation2 + $0x9c8] sm:$0xff] }
 0x87f   :  { %910 = vmatpush.msrb.mxu3 %v839_v0  ;;  %v862_v0 = vperm.slane %v860_v52, 0 }
 0x880   :  { %897 = vmatpush.msra.mxu2 %v856_v1  ;;  %v836_v1 = vld [vmem:[#allocation2 + $0x9a8] sm:$0xff] }
 0x881   :  { %871 = vmatpush.msra.mxu0 %v836_v1 }
 0x882   :  { %898 = vmatpush.msra.mxu2 %v854_v4  ;;  %v835_v4 = vld [vmem:[#allocation2 + $0x998] sm:$0xff] }
 0x884   :  { %899 = vmatpush.msra.mxu2 %v852_v5  ;;  %v832_v5 = vld [vmem:[#allocation2 + $0x978] sm:$0xff] }
 0x886   :  { %900 = vmatpush.msra.mxu2 %v850_v6  ;;  %v833_v6 = vld [vmem:[#allocation2 + $0x980] sm:$0xff] }
 0x888   :  { %901 = vmatpush.msra.mxu2 %v848_v7 }
 0x88a   :  { %902 = vmatpush.msra.mxu2 %v846_v8  ;;  %v830_v8 = vld [vmem:[#allocation2 + $0x960] sm:$0xff] }
 0x88c   :  { %903 = vmatpush.msra.mxu2 %v844_v9  ;;  %v831_v9 = vld [vmem:[#allocation2 + $0x968] sm:$0xff] }
 0x8e3   :  { %v625_v2 = vpop.permute.xlu1 %624 }
 0x8e4   :  { %v627_v3 = vmul.f32 %v625_v2, %v608_v41  ;;  %v845_v41 = vld [vmem:[#allocation2 + $0xa10] sm:$0xff] }
 0x8e5   :  { %943 = vmatpush.msra.mxu1 %v845_v41  ;;  %v837_v2 = vld [vmem:[#allocation2 + $0x9b0] sm:$0xff] }
 0x8e6   :  { %633 = vrot.lane.b32.xlu0 %v627_v3, %s1151_s5  ;;  %v834_v3 = vld [vmem:[#allocation2 + $0x990] sm:$0xff]  ;;  %911 = vmatpush.msrb.mxu3 %v837_v2 }
 0x8e7   :  { %872 = vmatpush.msra.mxu0 %v834_v3 }
 0x8e8   :  { %912 = vmatpush.msrb.mxu3 %v835_v4 }
 0x8e9   :  { %873 = vmatpush.msra.mxu0 %v832_v5 }
 0x8ea   :  { %913 = vmatpush.msrb.mxu3 %v833_v6 }
 0x8eb   :  { %v680_v50 = vpop.permute.xlu1 %679  ;;  %874 = vmatpush.msra.mxu0 %v830_v8 }
 0x8ec   :  { %914 = vmatpush.msrb.mxu3 %v831_v9 }
 0x8ed   :  { %875 = vmatpush.msra.mxu0 %v828_v11 }
 0x8ee   :  { %915 = vmatpush.msrb.mxu3 %v829_v12 }
 0x8ef   :  { %876 = vmatpush.msra.mxu0 %v826_v13 }
 0x8f0   :  { %916 = vmatpush.msrb.mxu3 %v827_v14 }
 0x8f1   :  { %877 = vmatpush.msra.mxu0 %v824_v15  ;;  %v1050_v15 = vld [vmem:[#allocation4 + $0xf] ss:$0 sm:$0xff] }
 0x8f2   :  { %917 = vmatpush.msrb.mxu3 %v825_v16 }
 0x8f3   :  { %878 = vmatpush.msra.mxu0 %v822_v17 }
 0x8f4   :  { %918 = vmatpush.msrb.mxu3 %v823_v18 }
 0x8f5   :  { %879 = vmatpush.msra.mxu0 %v820_v21 }
 0x8f6   :  { %919 = vmatpush.msrb.mxu3 %v821_v22 }
 0x8f7   :  { %880 = vmatpush.msra.mxu0 %v818_v24 }
 0x8f8   :  { %920 = vmatpush.msrb.mxu3 %v819_v25 }
 0x8f9   :  { %881 = vmatpush.msra.mxu0 %v816_v38 }
 0x8fa   :  { %921 = vmatpush.msrb.mxu3 %v817_v40 }
 0x8fb   :  { %882 = vmatpush.msra.mxu0 %v814_v42 }
 0x8fc   :  { %922 = vmatpush.msrb.mxu3 %v815_v43 }
 0x8fd   :  { %883 = vmatpush.msra.mxu0 %v812_v61 }
 0x8fe   :  { %923 = vmatpush.msrb.mxu3 %v813_v44 }
 0x958   :  { %v634_v37 = vpop.permute.xlu0 %633 }
 0x959   :  { %v638_v32 = vsel %vm637_vm8, %v636_v36, %v634_v37 }
 0x95a   :  { %1028 = vmatmul.msk.f32.vlgmr.msrb.gmra.mxu2 %vm655_vm9, %v638_v32 }
 0x962   :  { %1033 = vmatmul.msk.f32.vlgmr.msra.gmra.mxu2 %vm637_vm8, %v1237_v39 }
 0x9dd   :  { %v676_v48 = vpop.f32.mrf.mxu2 }
 0x9de   :  { %v677_v49 = vadd.f32 %v1048_v47, %v676_v48 }
 0x9e0   :  { %v682_v51 = vsel %vm283_vm5, %v677_v49, %v680_v50  ;;  %v973_v49 = vld [vmem:[#allocation2 + $0xb40] sm:$0xff]  ;;  %v972_v50 = vld [vmem:[#allocation2 + $0xb28] sm:$0xff] }
 0x9e1   :  { %1029 = vmatmul.msk.f32.vlgmr.msra.gmra.mxu3 %vm655_vm9, %v682_v51  ;;  %1030 = vmatmul.msk.f32.vlgmr.msrb.gmra.mxu1 %vm655_vm9, %v682_v51  ;;  %v971_v51 = vld [vmem:[#allocation2 + $0xb10] sm:$0xff] }
 0x9e2   :  { %991 = vmatpush.msrb.mxu2 %v973_v49 }
 0x9e4   :  { %992 = vmatpush.msrb.mxu2 %v972_v50 }
 0x9e5   :  { %v905_v9 = vpop.f32.mrf.mxu2 }
 0x9e6   :  { %993 = vmatpush.msrb.mxu2 %v971_v51 }
 0x9e9   :  { %1034 = vmatmul.msk.f32.vlgmr.msra.gmra.mxu1 %vm637_vm8, %v1237_v39 }
 0xa5e   :  { %v753_v56 = vpop.f32.mrf.mxu1 }
 0xa5f   :  { %v754_v57 = vadd.f32 %v753_v56, %v710_v53  ;;  %v970_v53 = vld [vmem:[#allocation2 + $0xaf8] sm:$0xff] }
 0xa60   :  { %994 = vmatpush.msrb.mxu2 %v970_v53 }
 0xa61   :  { %v1031_v31 = vmul.f32 -1.442695, %v754_v57  ;;  %v968_v57 = vld [vmem:[#allocation2 + $0xac8] sm:$0xff] }
 0xa62   :  { %995 = vmatpush.msrb.mxu2 %v969_v55 }
 0xa63   :  { %1083 = vpow2.f32 %v1031_v31 }
 0xa64   :  { %v733_v30 = vpop.f32.mrf.mxu3  ;;  %996 = vmatpush.msrb.mxu2 %v968_v57 }
 0xa65   :  { %v734_v35 = vadd.f32 %v733_v30, %v709_v27 }
 0xa66   :  { %v945_v59 = vpop.f32.mrf.mxu1 }
 0xa69   :  { %v1084_v7 = vpop.eup %1083 }
 0xa6a   :  { %v759_v10 = vadd.f32 1.0, %v1084_v7 }
 0xa6c   :  { %1085 = vrcp.f32 %v759_v10  ;;  %v771_v26 = vand.u32 2147483648, %v759_v10  ;;  %v769_v29 = vand.u32 2147483647, %v759_v10  ;;  %vm765_vm11 = vweird.f32 %v759_v10 }
 0xa6e   :  { %v772_v34 = vor.u32 1.1754944e-38, %v771_v26  ;;  %vm770_vm13 = vcmp.eq.f32.partialorder %v769_v29, 8.507059e+37 }
 0xa72   :  { %v1086_v19 = vpop.eup %1085 }
 0xa73   :  { %v761_v20 = vmul.f32 %v1086_v19, %v759_v10  ;;  %vm766_vm10 = vweird.f32 %v1086_v19 }
 0xa74   :  { %vm767_vm12 = vmor %vm765_vm11, %vm766_vm10 }
 0xa75   :  { %v762_v23 = vsub.f32 1.0, %v761_v20 }
 0xa77   :  { %v763_v28 = vmul.f32 %v1086_v19, %v762_v23 }
 0xa79   :  { %v764_v33 = vadd.f32 %v1086_v19, %v763_v28 }
 0xa7b   :  { %v768_v36 = vsel %vm767_vm12, %v1086_v19, %v764_v33 }
 0xa7c   :  { %v773_v37 = vsel %vm770_vm13, %v772_v34, %v768_v36 }
 0xa7d   :  { %v775_v32 = vmul.f32 %v773_v37, %v734_v35 }
 0xa7f   :  { %1032 = vmatmul.msk.f32.vlgmr.msrb.gmra.mxu0 %vm782_vm14, %v775_v32 }
 0xafc   :  { %v803_v46 = vpop.f32.mrf.mxu0 }
 0xafd   :  { %v804_v41 = vadd.f32 %v1049_v45, %v803_v46 }
 0xaff   :  { %v806_v47 = vmax.f32 %v804_v41, 0.0 }
 0xb01   :  { %v811_v48 = vsel %vm637_vm8, %v806_v47, %v1237_v39 }
 0xb02   :  { %884 = vmatmul.f32.vlgmr.msra.gmra.mxu0 %v811_v48  ;;  %924 = vmatmul.f32.vlgmr.msrb.gmra.mxu3 %v811_v48 }
 0xb7f   :  { %v885_v2 = vpop.f32.mrf.mxu0 }
 0xb80   :  { %v886_v5 = vadd.f32 %v885_v2, %v862_v0 }
 0xb82   :  { %v906_v11 = vadd.f32 %v905_v9, %v886_v5 }
 0xb85   :  { %v925_v56 = vpop.f32.mrf.mxu3 }
 0xb86   :  { %v926_v58 = vadd.f32 %v925_v56, %v863_v54 }
 0xb88   :  { %v946_v60 = vadd.f32 %v945_v59, %v926_v58 }
 0xb8a   :  { %v1035_v39 = vmul.f32 -1.442695, %v946_v60 }
 0xb8c   :  { %1087 = vpow2.f32 %v1035_v39 }
 0xb92   :  { %v1088_v62 = vpop.eup %1087 }
 0xb93   :  { %v951_v31 = vadd.f32 1.0, %v1088_v62 }
 0xb95   :  { %1089 = vrcp.f32 %v951_v31  ;;  %v963_v4 = vand.u32 2147483648, %v951_v31  ;;  %v961_v7 = vand.u32 2147483647, %v951_v31  ;;  %vm957_vm0 = vweird.f32 %v951_v31 }
 0xb97   :  { %v964_v10 = vor.u32 1.1754944e-38, %v963_v4  ;;  %vm962_vm2 = vcmp.eq.f32.partialorder %v961_v7, 8.507059e+37 }
 0xb9b   :  { %v1090_v63 = vpop.eup %1089 }
 0xb9c   :  { %v953_v1 = vmul.f32 %v1090_v63, %v951_v31  ;;  %vm958_vm15 = vweird.f32 %v1090_v63 }
 0xb9d   :  { %vm959_vm1 = vmor %vm957_vm0, %vm958_vm15 }
 0xb9e   :  { %v954_v3 = vsub.f32 1.0, %v953_v1 }
 0xba0   :  { %v955_v6 = vmul.f32 %v1090_v63, %v954_v3 }
 0xba2   :  { %v956_v8 = vadd.f32 %v1090_v63, %v955_v6 }
 0xba4   :  { %v960_v12 = vsel %vm959_vm1, %v1090_v63, %v956_v8 }
 0xba5   :  { %v965_v13 = vsel %vm962_vm2, %v964_v10, %v960_v12 }
 0xba6   :  { %v967_v14 = vmul.f32 %v965_v13, %v906_v11 }
 0xba8   :  { %1036 = vmatmul.msk.f32.vlgmr.msrb.gmra.mxu2 %vm283_vm5, %v967_v14 }
 0xc2b   :  { %v998_v16 = vpop.f32.mrf.mxu2 }
 0xc2c   :  { %v999_v17 = vadd.f32 %v1050_v15, %v998_v16 }
 0xc2e   :  { %v1002_v18 = vrot.slane %v999_v17, 1  ;;  %1004 = vst [vmem:[%s1262_s3] sm:$0x1] %v999_v17 }
 0xc30   :  { %1005 = vst [vmem:[%s1262_s3 + $0x1] sm:$0x1] %v1002_v18 }
 0xc31   :  { %1010 = vsyncpa [#allocation3], 1 }
 0xc32   :  { %1011 = vsyncpa [#allocation5], 1 }

</bundles_post_ra>
